<compile_context>
chip_gen: v7x
topology: tpu7x:2x2x1
jax: 0.10.0
libtpu: 0.0.40
codegen_flags: <defaults>
</compile_context>

<pallas_src>
import functools

import jax
import jax.numpy as jnp
from jax.experimental import pallas as pl
from jax.experimental.pallas import tpu as pltpu

EPSILON = 1e-12
_LANE = 128
_SUBLANE = 8


def _round_up(n, m):
    return (n + m - 1) // m * m


def _pad_axis(a, axis, multiple):
    size = a.shape[axis]
    pad = _round_up(size, multiple) - size
    if pad == 0:
        return a
    widths = [(0, 0)] * a.ndim
    widths[axis] = (0, pad)
    return jnp.pad(a, widths)


def _pick_seq_tile(s_len, d_pad):
    """Rows per grid step: ~1 MiB of f32 per x tile, capped at 512 rows
    (measured sweet spot for HBM roofline), multiple of 8 (sublane).  With
    in+out double-buffering this stays far below v5e's 16 MiB scoped default
    and re-derives itself for larger feature dims (and for v7x's smaller VMEM)."""
    target_elems = (1 << 20) // 4                     # ~1 MiB of f32
    t = min(512, max(_SUBLANE, target_elems // d_pad), _round_up(s_len, _SUBLANE))
    return max(_SUBLANE, (t // _SUBLANE) * _SUBLANE)


# ----------------------------------------------------------------------------
# Kernel: one (1, tS, Dp) tile of x, per-row (or per-batch) gamma/beta.
# ----------------------------------------------------------------------------
def _ln_kernel(x_ref, gamma_ref, beta_ref, o_ref, *, inv_d):
    x = x_ref[0].astype(jnp.float32)                       # (tS, Dp)
    # One-pass row statistics; padded feature columns are zero so they do not
    # perturb the sums, and the divisor is the TRUE feature dim (inv_d).
    s1 = jnp.sum(x, axis=-1, keepdims=True)
    s2 = jnp.sum(x * x, axis=-1, keepdims=True)
    mean = s1 * inv_d
    var = s2 * inv_d - mean * mean
    # torch reference: std = (var + eps) ** 2 ; out = (x - mean) / std
    r = pl.reciprocal(var + EPSILON, approx=False)         # exact: keeps 1e-5 check
    scale = r * r                                          # (tS, 1) == 1 / std
    gamma = gamma_ref[0].astype(jnp.float32)               # (1, Dp)
    beta = beta_ref[0].astype(jnp.float32)                 # (1, Dp)
    out = (x - mean) * scale * gamma + beta
    o_ref[0] = out.astype(o_ref.dtype)


# ----------------------------------------------------------------------------
# Shared wrapper: pads to (8,128)-friendly shapes, tiles S, launches the grid.
# gamma_rows / beta_rows: (R, D) with R == 1 (shared) or R == B (per-batch).
# ----------------------------------------------------------------------------
def _ln_pallas(x, gamma_rows, beta_rows):
    B, S, D = x.shape
    per_batch = gamma_rows.shape[0] != 1

    # Lane-dense feature dim (pad -> slice); statistics still divide by true D.
    d_pad = _round_up(D, _LANE)
    x_p = _pad_axis(x, 2, _LANE)
    gamma_p = _pad_axis(gamma_rows.astype(jnp.float32), 1, _LANE)
    beta_p = _pad_axis(beta_rows.astype(jnp.float32), 1, _LANE)
    # Shape params as (R, 1, Dp) so their block equals the full last-two dims.
    gamma_p = gamma_p[:, None, :]
    beta_p = beta_p[:, None, :]

    t_s = _pick_seq_tile(S, d_pad)
    x_p = _pad_axis(x_p, 1, t_s)
    s_pad = x_p.shape[1]

    row_map = (lambda b, s: (b, 0, 0)) if per_batch else (lambda b, s: (0, 0, 0))

    out = pl.pallas_call(
        functools.partial(_ln_kernel, inv_d=1.0 / D),
        out_shape=jax.ShapeDtypeStruct((B, s_pad, d_pad), x.dtype),
        grid=(B, s_pad // t_s),
        in_specs=[
            pl.BlockSpec((1, t_s, d_pad), lambda b, s: (b, s, 0)),
            pl.BlockSpec((1, 1, d_pad), row_map),
            pl.BlockSpec((1, 1, d_pad), row_map),
        ],
        out_specs=pl.BlockSpec((1, t_s, d_pad), lambda b, s: (b, s, 0)),
        compiler_params=pltpu.CompilerParams(
            dimension_semantics=("parallel", "parallel")),
    )(x_p, gamma_p, beta_p)

    if s_pad != S or d_pad != D:
        out = out[:, :S, :D]
    return out


# ----------------------------------------------------------------------------
# Public entry points (mirror the torch module's two modes).
# ----------------------------------------------------------------------------
def layer_norm(x, beta, gamma):
    """Non-conditional path (conditional=False, center=True, scale=True)."""
    D = x.shape[-1]
    return _ln_pallas(x, gamma.reshape(1, D), beta.reshape(1, D))


def cond_layer_norm(x, cond, w_hidden, w_beta, w_gamma, beta, gamma):
    """Conditional path (conditional=True, hidden_activation='linear').
    w_hidden: (C, H), w_beta/w_gamma: (H, D) (transposed from torch (out,in)).
    The cond -> beta/gamma matmuls are hoisted to XLA (batched, done once),
    then applied per batch element inside the memory-bound LN kernel."""
    h = jnp.dot(cond, w_hidden)                # hidden_dense, identity activation
    beta_b = jnp.dot(h, w_beta) + beta         # (B, D)
    gamma_b = jnp.dot(h, w_gamma) + gamma      # (B, D)
    return _ln_pallas(x, gamma_b, beta_b)


# ----------------------------------------------------------------------------
# Pure-JAX references (mirror the torch forward exactly) for verification.
# ----------------------------------------------------------------------------
def _ref_ln(x, beta, gamma):
    mean = jnp.mean(x, axis=-1, keepdims=True)
    xc = x - mean
    var = jnp.mean(xc ** 2, axis=-1, keepdims=True)
    std = (var + EPSILON) ** 2
    return xc / std * gamma + beta


def _ref_cond_ln(x, cond, w_hidden, w_beta, w_gamma, beta, gamma):
    h = cond @ w_hidden                        # hidden_dense, linear activation
    h = h[:, None, :]                          # unsqueeze(1) to align with (B, S, D)
    b = h @ w_beta + beta                      # beta_dense(cond) + beta
    g = h @ w_gamma + gamma                    # gamma_dense(cond) + gamma
    return _ref_ln(x, b, g)


if __name__ == "__main__":
    key = jax.random.PRNGKey(0)
    kx, kc, kh, kb, kg, kx2 = jax.random.split(key, 6)

    # --- lane-dense shapes (the intended fast path, exercises S tiling) -----
    B, S, D, C, H = 2, 1024, 128, 32, 32
    x = jax.random.normal(kx, (B, S, D), dtype=jnp.float32)
    cond = jax.random.normal(kc, (B, C), dtype=jnp.float32)

    # Module parameters: beta = zeros(D), gamma = ones(D) as in __init__.
    beta = jnp.zeros((D,), jnp.float32)
    gamma = jnp.ones((D,), jnp.float32)
    # The module zero-inits beta_dense/gamma_dense; use small deterministic
    # non-zero values so the conditional path is actually exercised.
    w_hidden = 0.1 * jax.random.normal(kh, (C, H), dtype=jnp.float32)
    w_beta = 0.05 * jax.random.normal(kb, (H, D), dtype=jnp.float32)
    w_gamma = 0.05 * jax.random.normal(kg, (H, D), dtype=jnp.float32)

    out_plain = jax.block_until_ready(layer_norm(x, beta, gamma))
    assert jnp.allclose(out_plain, _ref_ln(x, beta, gamma), rtol=1e-5, atol=2e-5)

    out_cond = jax.block_until_ready(
        cond_layer_norm(x, cond, w_hidden, w_beta, w_gamma, beta, gamma))
    assert jnp.allclose(
        out_cond, _ref_cond_ln(x, cond, w_hidden, w_beta, w_gamma, beta, gamma),
        rtol=1e-5, atol=2e-5)

    # --- non-128-aligned shapes (exercises the pad/slice path) --------------
    B2, S2, D2 = 2, 8, 32
    x2 = jax.random.normal(kx2, (B2, S2, D2), dtype=jnp.float32)
    beta2 = 0.1 * jnp.ones((D2,), jnp.float32)
    gamma2 = 1.5 * jnp.ones((D2,), jnp.float32)
    out2 = jax.block_until_ready(layer_norm(x2, beta2, gamma2))
    assert jnp.allclose(out2, _ref_ln(x2, beta2, gamma2), rtol=1e-5, atol=2e-5)

    print("KERNEL_OK")
</pallas_src>

<mosaic_0001>
module attributes {stable_mosaic.version = 11 : i64} {
  func.func @_ln_kernel(%arg0: i32, %arg1: i32, %arg2: memref<1x512x128xf32, #tpu.memory_space<vmem>>, %arg3: memref<1x1x128xf32, #tpu.memory_space<vmem>>, %arg4: memref<1x1x128xf32, #tpu.memory_space<vmem>>, %arg5: memref<1x512x128xf32, #tpu.memory_space<vmem>>) attributes {dimension_semantics = [#tpu.dimension_semantics<parallel>, #tpu.dimension_semantics<parallel>], iteration_bounds = array<i64: 2, 2>, scalar_prefetch = 0 : i64, scratch_operands = 0 : i64, tpu.core_type = #tpu.core_type<tc>, window_params = [{transform_indices = @transform_0, window_bounds = array<i64: 1, 512, 128>}, {pipeline_mode = #tpu.pipeline_mode<synchronous>, transform_indices = @transform_1, window_bounds = array<i64: 1, 1, 128>}, {pipeline_mode = #tpu.pipeline_mode<synchronous>, transform_indices = @transform_2, window_bounds = array<i64: 1, 1, 128>}, {transform_indices = @transform_3, window_bounds = array<i64: 1, 512, 128>}]} {
    %c0 = arith.constant 0 : index
    %c0_0 = arith.constant 0 : index
    %c0_1 = arith.constant 0 : index
    %0 = vector.load %arg2[%c0, %c0_0, %c0_1] : memref<1x512x128xf32, #tpu.memory_space<vmem>>, vector<1x512x128xf32>
    %1 = vector.shape_cast %0 : vector<1x512x128xf32> to vector<512x128xf32>
    %cst = arith.constant dense<0.000000e+00> : vector<512xf32>
    %2 = vector.multi_reduction <add>, %1, %cst [1] : vector<512x128xf32> to vector<512xf32>
    %3 = vector.shape_cast %2 : vector<512xf32> to vector<512x1xf32>
    %4 = arith.mulf %1, %1 : vector<512x128xf32>
    %cst_2 = arith.constant dense<0.000000e+00> : vector<512xf32>
    %5 = vector.multi_reduction <add>, %4, %cst_2 [1] : vector<512x128xf32> to vector<512xf32>
    %6 = vector.shape_cast %5 : vector<512xf32> to vector<512x1xf32>
    %cst_3 = arith.constant 7.812500e-03 : f32
    %7 = vector.broadcast %cst_3 : f32 to vector<512x1xf32>
    %8 = arith.mulf %3, %7 : vector<512x1xf32>
    %cst_4 = arith.constant 7.812500e-03 : f32
    %9 = vector.broadcast %cst_4 : f32 to vector<512x1xf32>
    %10 = arith.mulf %6, %9 : vector<512x1xf32>
    %11 = arith.mulf %8, %8 : vector<512x1xf32>
    %12 = arith.subf %10, %11 : vector<512x1xf32>
    %cst_5 = arith.constant 9.99999996E-13 : f32
    %13 = vector.broadcast %cst_5 : f32 to vector<512x1xf32>
    %14 = arith.addf %12, %13 : vector<512x1xf32>
    %15 = tpu.reciprocal %14 : vector<512x1xf32> -> vector<512x1xf32>
    %16 = arith.mulf %15, %15 : vector<512x1xf32>
    %c0_6 = arith.constant 0 : index
    %c0_7 = arith.constant 0 : index
    %c0_8 = arith.constant 0 : index
    %17 = vector.load %arg3[%c0_6, %c0_7, %c0_8] : memref<1x1x128xf32, #tpu.memory_space<vmem>>, vector<1x1x128xf32>
    %18 = vector.shape_cast %17 : vector<1x1x128xf32> to vector<1x128xf32>
    %c0_9 = arith.constant 0 : index
    %c0_10 = arith.constant 0 : index
    %c0_11 = arith.constant 0 : index
    %19 = vector.load %arg4[%c0_9, %c0_10, %c0_11] : memref<1x1x128xf32, #tpu.memory_space<vmem>>, vector<1x1x128xf32>
    %20 = vector.shape_cast %19 : vector<1x1x128xf32> to vector<1x128xf32>
    %21 = vector.broadcast %8 : vector<512x1xf32> to vector<512x128xf32>
    %22 = arith.subf %1, %21 : vector<512x128xf32>
    %23 = vector.broadcast %16 : vector<512x1xf32> to vector<512x128xf32>
    %24 = arith.mulf %22, %23 : vector<512x128xf32>
    %25 = vector.broadcast %18 : vector<1x128xf32> to vector<512x128xf32>
    %26 = arith.mulf %24, %25 : vector<512x128xf32>
    %27 = vector.broadcast %20 : vector<1x128xf32> to vector<512x128xf32>
    %28 = arith.addf %26, %27 : vector<512x128xf32>
    %c0_12 = arith.constant 0 : index
    %c0_13 = arith.constant 0 : index
    %c0_14 = arith.constant 0 : index
    %29 = vector.load %arg5[%c0_12, %c0_13, %c0_14] : memref<1x512x128xf32, #tpu.memory_space<vmem>>, vector<1x512x128xf32>
    %30 = vector.shape_cast %29 : vector<1x512x128xf32> to vector<512x128xf32>
    %31 = vector.shape_cast %28 : vector<512x128xf32> to vector<1x512x128xf32>
    tpu.vector_store %arg5[%c0_12, %c0_13, %c0_14], %31 {strides = array<i32>} : memref<1x512x128xf32, #tpu.memory_space<vmem>>, vector<1x512x128xf32>,
    return
  }
  func.func @transform_0(%arg0: i32, %arg1: i32) -> (i32, i32, i32) {
    %c0_i32 = arith.constant 0 : i32
    %c0_i32_0 = arith.constant 0 : i32
    return %arg0, %arg1, %c0_i32 : i32, i32, i32
  }
  func.func @transform_1(%arg0: i32, %arg1: i32) -> (i32, i32, i32) {
    %c0_i32 = arith.constant 0 : i32
    %c0_i32_0 = arith.constant 0 : i32
    %c0_i32_1 = arith.constant 0 : i32
    %c0_i32_2 = arith.constant 0 : i32
    return %c0_i32, %c0_i32_0, %c0_i32_1 : i32, i32, i32
  }
  func.func @transform_2(%arg0: i32, %arg1: i32) -> (i32, i32, i32) {
    %c0_i32 = arith.constant 0 : i32
    %c0_i32_0 = arith.constant 0 : i32
    %c0_i32_1 = arith.constant 0 : i32
    %c0_i32_2 = arith.constant 0 : i32
    return %c0_i32, %c0_i32_0, %c0_i32_1 : i32, i32, i32
  }
  func.func @transform_3(%arg0: i32, %arg1: i32) -> (i32, i32, i32) {
    %c0_i32 = arith.constant 0 : i32
    %c0_i32_0 = arith.constant 0 : i32
    return %arg0, %arg1, %c0_i32 : i32, i32, i32
  }
}

</mosaic_0001>

<bundles_post_ra>
// kernel: tpu_custom_call.1
= control target key start
LH: loop header
LB: loop body
LE: loop exit
PB: predicated region body
PF: predicated region fallthrough
CT: control target
= control target key end

     0   :  { %8 = vsyncpa [#allocation3], 0  ;;  %s3624_s0 = inlined_call_operand.hbm [shape: f32[2,1024,128], index: 0, kind: input, shape index: {}]   ;;  %s3625_s1 = inlined_call_operand.vmem [shape: f32[1,1,128], index: 1, kind: input, shape index: {}]   ;;  %s3626_s2 = inlined_call_operand.vmem [shape: f32[1,1,128], index: 2, kind: input, shape index: {}]   ;;  %s3627_s3 = inlined_call_operand.hbm [shape: f32[2,1024,128], index: 3, kind: output, shape index: {}]  }
   0x1   :  { %10 = vsyncpa [#allocation3 + $0x1], 0 }
   0x2   :  { %11 = vsyncpa [#allocation4], 0 }
   0x3   :  { %13 = vsyncpa [#allocation4 + $0x1], 0  ;;  %s1876_s12 = smov 0   ;;  %s1878_s13 = smov 0  }
   0x4   :  { %s1880_s14 = smov 0   ;;  %s1882_s15 = smov 0  }
   0x5   :  { %s1884_s16 = smov 0   ;;  %s1886_s17 = smov 0  }
   0x6   :  { %s1888_s18 = smov 0   ;;  %s1890_s19 = smov 0  }
   0x7 LB: > { %s1481_s20 = sadd.s32 4294967295, %s1848_s19   ;;  %s1482_s21 = sadd.s32 4294967294, %s1848_s19   ;;  %s1848_s19 = sphi %s1890_s19, %s19_s19   ;;  %s1844_s18 = sphi %s1888_s18, %s4223_s18   ;;  %s1840_s17 = sphi %s1886_s17, %s4222_s17   ;;  %s1836_s16 = sphi %s1884_s16, %s4221_s16   ;;  %s1832_s15 = sphi %s1882_s15, %s4220_s15   ;;  %s1828_s14 = sphi %s1880_s14, %s4219_s14   ;;  %s1824_s13 = sphi %s1878_s13, %s4218_s13   ;;  %s1820_s12 = sphi %s1876_s12, %s4217_s12  }
   0x8   : > { %s28_s22 = sadd.s32 1, %s1840_s17  ;;  %s31_s23 = sadd.s32 1, %s1844_s18 }
   0x9   : > { %p29_p0 = scmp.ge.s32.totalorder %s28_s22, 2  ;;  %s40_s24 = sadd.s32 1, %s1828_s14 }
   0xa   : > { %p47_p1 = scmp.ne.s32.totalorder %s1828_s14, %s1824_s13  ;;  %p48_p2 = scmp.eq.s32.totalorder %s1848_s19, 0 }
   0xb   : > { %s4225_s22 = smov (%p29_p0, %s28_s22), 0  ;;  %s4227_s23 = smov (!%p29_p0, %s31_s23), %s1844_s18 }
   0xc   : > { %s36_s25 = ssub.s32 %s1840_s17, %s4225_s22  ;;  %p1929_p3 = por %p48_p2, %p47_p1 }
   0xd   : > { %p33_p4 = scmp.ge.s32.totalorder %s4227_s23, 2  ;;  %p53_p5 = scmp.ne.s32.totalorder %s1824_s13, %s1820_s12 }
   0xe   : > { %p54_p6 = scmp.eq.s32.totalorder %s1481_s20, 0  ;;  %p121_p7 = scmp.eq.s32.totalorder %s1481_s20, 3 }
   0xf   : > { %s4229_s23 = smov (%p33_p4, %s4227_s23), 0  ;;  %p127_p10 = scmp.eq.s32.totalorder %s1482_s21, 3 }
  0x10   : > { %3807 = sst [smem:[#allocation8_spill]] %s4229_s23  ;;  %p1937_p8 = por %p54_p6, %p53_p5 }
  0x11   : > { %p1941_p9 = por %p121_p7, %p47_p1  ;;  %s35_s29 = ssub.s32 %s1844_s18, %s4229_s23 }
  0x12   : > { %s37_s30 = sor.u32 %s36_s25, %s35_s29  ;;  %p1947_p12 = por %p127_p10, %p53_p5 }
  0x13   : > { %s3809_s28 = scalar_select %p1941_p9, 1, 0 }
  0x14   : > { %p38_p11 = scmp.eq.s32.totalorder %s37_s30, 0  ;;  %p1512_p13 = scmp.lt.s32.totalorder %s1848_s19, 4 }
  0x15   : > { %s3810_s4 = scalar_select %p1947_p12, 1, 0 }
  0x16   : > { %s153_s5 = sand.u32 1, %s1828_s14   ;;  %s1486_s8 = sshll.u32 %s1840_s17, 6 }
  0x17   : > { %s1954_s6 = scalar_select %p38_p11, %s1828_s14, %s40_s24  }
  0x18   : > { %s1485_s7 = sshll.u32 %s153_s5, 9  ;;  %s1487_s9 = sshll.u32 %s1844_s18, 7 }
  0x19   : > { %s157_s10 = scalar_lea.vmem [#allocation2], %s1485_s7  ;;  %s163_s20 = sadd.s32 %s1487_s9, %s1486_s8 }
  0x1a   : > { %s166_s11 = sshll.u32 %s157_s10, 4  ;;  %s1488_s23 = sshll.u32 %s163_s20, 7  ;;  %s1958_s11 = int_to_ptr.vmem [resolvable:$true] %s166_s11 }
  0x1b   : > { %p1962_p0 = pnand %p1512_p13, %p1929_p3  ;;  %s1969_s24 = scalar_lea.hbm %s3624_s0, %s1488_s23 }
  0x1c   : > { %s1971_s30 = scalar_lea.sflag [#allocation3], %s153_s5  ;;  %s1720_s7 = scalar_lea.hbm %s1969_s24, 8192 }
  0x1d   : > { %p1721_p1 = scmp.ne.s32.totalorder %s1969_s24, %s1720_s7  ;;  %p1722_p2 = pneg %p1962_p0 }
  0x1e   : > { %s1725_s9 = scalar_lea.hbm %s3624_s0, 32768  ;;  %p1726_p5 = scmp.lt.u32.totalorder %s1969_s24, %s3624_s0 }
  0x1f   : > { %p1723_p3 = pnand %p1722_p2, %p1721_p1  ;;  %p1727_p6 = scmp.lt.u32.totalorder %s1725_s9, %s1720_s7 }
  0x20   : > { %p1729_p10 = scmp.lt.u32.totalorder %s1720_s7, %s1969_s24 }
  0x21   : > { %p1724_p4 = pneg %p1723_p3  ;;  %p1728_p7 = por %p1727_p6, %p1726_p5 }
  0x23   : > { %p1730_p11 = por %p1729_p10, %p1728_p7 }
  0x25   : > { %p1731_p13 = pnand %p1730_p11, %p1724_p4 }
  0x27   : > { %1734 = shalt.err (!%p1731_p13)
}
  0x28   : > { %s1735_s5 = scalar_lea.vmem %s1958_s11, 8192  ;;  %s1850_s20 = smov [#allocation2]  }
  0x29   : > { %p1736_p1 = scmp.ne.s32.totalorder %s1958_s11, %s1735_s5  ;;  %s1740_s25 = sshll.u32 %s1850_s20, 4  ;;  %s1741_s25 = int_to_ptr.vmem [resolvable:$false] %s1740_s25 }
  0x2a   : > { %s1742_s29 = scalar_lea.vmem %s1741_s25, 16384  ;;  %p1743_p9 = scmp.lt.s32.totalorder %s1958_s11, %s1741_s25 }
  0x2b   : > { %p1738_p3 = pnand %p1736_p1, %p1722_p2  ;;  %p1744_p5 = scmp.lt.s32.totalorder %s1742_s29, %s1735_s5 }
  0x2d   : > { %p1739_p12 = pneg %p1738_p3  ;;  %p1745_p6 = por %p1744_p5, %p1743_p9 }
  0x2f   : > { %p1746_p7 = pnand %p1745_p6, %p1739_p12 }
  0x31   : > { %1749 = shalt.err (!%p1746_p7)
}
  0x32   : > { %s1851_s7 = smov 128   ;;  %s1852_s26 = smov 8  }
  0x33   : > { %1507 = dma.hbm_to_vmem [thread:$0]  (!%p1962_p0), %s1969_s24, 8192, %s1958_s11, %s1971_s30, %s1851_s7, %s1851_s7, %s1852_s26  }
  0x34   : > { %p1489_p2 = scmp.ge.s32.totalorder %s1848_s19, 1  ;;  %p174_p4 = scmp.lt.s32.totalorder %s1848_s19, 5 }
  0x36   : > { %p175_p10 = pnand %p1489_p2, %p174_p4 }
  0x38   : > { %178 = sbr.rel (%p175_p10) target bundleno = 516 (0x204), region = 32 }
  0x3f   : > { %s2002_s8 = sand.u32 1, %s1824_s13  }
  0x40   : > { %s1490_s9 = sshll.u32 %s2002_s8, 9  ;;  %s181_s23 = scalar_lea.sflag [#allocation3], %s2002_s8 }
  0x41   : > { %s2008_s10 = scalar_lea.vmem [#allocation2], %s1490_s9 }
  0x42   : > { %1811 = dma.done.wait (%p1937_p8), %s181_s23, 8192  }
  0x43   : > { %1813 = vsyncadd (%p1937_p8), %s181_s23, 4294959104  ;;  %v2015_v0 = vld [vmem:[%s2008_s10 + $0x10] sm:$0xff]  ;;  %v2018_v1 = vld [vmem:[%s2008_s10] sm:$0xff]  ;;  %s3138_s30 = scalar_lea.vmem [#allocation5], %s1490_s9  ;;  %s1495_s7 = sshll.u32 %s1832_s15, 6 }
  0x44   : > { %3812 = vst [vmem:[#allocation9_spill] sm:$0xff] %v2015_v0  ;;  %3813 = vst [vmem:[#allocation10_spill] sm:$0xff] %v2018_v1  ;;  %277 = vadd.xlane.f32.xlu1 %v2015_v0  ;;  %273 = vadd.xlane.f32.xlu0 %v2018_v1  ;;  %v2023_v2 = vld [vmem:[%s2008_s10 + $0x18] sm:$0xff]  ;;  %v2026_v3 = vld [vmem:[%s2008_s10 + $0x8] sm:$0xff]  ;;  %s1496_s26 = sshll.u32 %s1836_s16, 7  ;;  %s1391_s9 = sshll.u32 %s3138_s30, 4  ;;  %s3567_s9 = int_to_ptr.vmem [resolvable:$true] %s1391_s9 }
  0x45   : > { %3814 = vst [vmem:[#allocation11_spill] sm:$0xff] %v2023_v2  ;;  %3815 = vst [vmem:[#allocation12_spill] sm:$0xff] %v2026_v3  ;;  %v2031_v4 = vld [vmem:[%s2008_s10 + $0x28] sm:$0xff]  ;;  %v2034_v5 = vld [vmem:[%s2008_s10 + $0x20] sm:$0xff]  ;;  %s1388_s15 = sadd.s32 %s1496_s26, %s1495_s7  ;;  %s1376_s11 = scalar_lea.sflag [#allocation4], %s2002_s8 }
  0x46   : > { %3816 = vst [vmem:[#allocation13_spill] sm:$0xff] %v2031_v4  ;;  %3817 = vst [vmem:[#allocation14_spill] sm:$0xff] %v2034_v5  ;;  %v2039_v6 = vld [vmem:[%s2008_s10 + $0x38] sm:$0xff]  ;;  %v2042_v7 = vld [vmem:[%s2008_s10 + $0x30] sm:$0xff]  ;;  %s1497_s16 = sshll.u32 %s1388_s15, 7  ;;  %s1750_s21 = scalar_lea.vmem %s3567_s9, 8192 }
  0x47   : > { %3818 = vst [vmem:[#allocation15_spill] sm:$0xff] %v2039_v6  ;;  %3819 = vst [vmem:[#allocation16_spill] sm:$0xff] %v2042_v7  ;;  %v2047_v8 = vld [vmem:[%s2008_s10 + $0x48] sm:$0xff]  ;;  %v2050_v9 = vld [vmem:[%s2008_s10 + $0x40] sm:$0xff]  ;;  %s3565_s27 = scalar_lea.hbm %s3627_s3, %s1497_s16  ;;  %p1751_p8 = scmp.ne.s32.totalorder %s3567_s9, %s1750_s21 }
  0x48   : > { %279 = vadd.xlane.f32.xlu1 %v2023_v2  ;;  %275 = vadd.xlane.f32.xlu0 %v2026_v3  ;;  %3820 = vst [vmem:[#allocation17_spill] sm:$0xff] %v2047_v8  ;;  %3821 = vst [vmem:[#allocation18_spill] sm:$0xff] %v2050_v9  ;;  %v2055_v10 = vld [vmem:[%s2008_s10 + $0x58] sm:$0xff]  ;;  %v2058_v11 = vld [vmem:[%s2008_s10 + $0x50] sm:$0xff]  ;;  %p4214_p9 = scmp.ne.s32.totalorder %s3809_s28, 0  ;;  %s1853_s24 = smov [#allocation5]  }
  0x49   : > { %3822 = vst [vmem:[#allocation19_spill] sm:$0xff] %v2055_v10  ;;  %3823 = vst [vmem:[#allocation20_spill] sm:$0xff] %v2058_v11  ;;  %v2063_v12 = vld [vmem:[%s2008_s10 + $0x68] sm:$0xff]  ;;  %v2066_v13 = vld [vmem:[%s2008_s10 + $0x60] sm:$0xff]  ;;  %s1754_s5 = sshll.u32 %s1853_s24, 4  ;;  %s1755_s5 = int_to_ptr.vmem [resolvable:$false] %s1754_s5 }
  0x4a   : > { %3824 = vst [vmem:[#allocation21_spill] sm:$0xff] %v2063_v12  ;;  %3825 = vst [vmem:[#allocation22_spill] sm:$0xff] %v2066_v13  ;;  %v2071_v14 = vld [vmem:[%s2008_s10 + $0x78] sm:$0xff]  ;;  %v2074_v15 = vld [vmem:[%s2008_s10 + $0x70] sm:$0xff]  ;;  %p1752_p12 = pnand %p1751_p8, %p4214_p9  ;;  %s1756_s20 = scalar_lea.vmem %s1755_s5, 16384 }
  0x4b   : > { %3826 = vst [vmem:[#allocation23_spill] sm:$0xff] %v2071_v14  ;;  %3827 = vst [vmem:[#allocation24_spill] sm:$0xff] %v2074_v15  ;;  %v2079_v16 = vld [vmem:[%s2008_s10 + $0x88] sm:$0xff]  ;;  %v2082_v17 = vld [vmem:[%s2008_s10 + $0x80] sm:$0xff]  ;;  %p1757_p11 = scmp.lt.s32.totalorder %s3567_s9, %s1755_s5  ;;  %p1758_p13 = scmp.lt.s32.totalorder %s1756_s20, %s1750_s21 }
  0x4c   : > { %283 = vadd.xlane.f32.xlu1 %v2031_v4  ;;  %281 = vadd.xlane.f32.xlu0 %v2034_v5  ;;  %3828 = vst [vmem:[#allocation25_spill] sm:$0xff] %v2079_v16  ;;  %3829 = vst [vmem:[#allocation26_spill] sm:$0xff] %v2082_v17  ;;  %v2087_v18 = vld [vmem:[%s2008_s10 + $0x98] sm:$0xff]  ;;  %v2090_v19 = vld [vmem:[%s2008_s10 + $0x90] sm:$0xff]  ;;  %p1753_p0 = pneg %p1752_p12 }
  0x4d   : > { %3830 = vst [vmem:[#allocation27_spill] sm:$0xff] %v2087_v18  ;;  %3831 = vst [vmem:[#allocation28_spill] sm:$0xff] %v2090_v19  ;;  %v2095_v20 = vld [vmem:[%s2008_s10 + $0xa8] sm:$0xff]  ;;  %v2098_v21 = vld [vmem:[%s2008_s10 + $0xa0] sm:$0xff]  ;;  %p1759_p1 = por %p1758_p13, %p1757_p11 }
  0x4e   : > { %3832 = vst [vmem:[#allocation29_spill] sm:$0xff] %v2095_v20  ;;  %3833 = vst [vmem:[#allocation30_spill] sm:$0xff] %v2098_v21  ;;  %v2103_v22 = vld [vmem:[%s2008_s10 + $0xb8] sm:$0xff]  ;;  %v2106_v23 = vld [vmem:[%s2008_s10 + $0xb0] sm:$0xff] }
  0x4f   : > { %3834 = vst [vmem:[#allocation31_spill] sm:$0xff] %v2103_v22  ;;  %3835 = vst [vmem:[#allocation32_spill] sm:$0xff] %v2106_v23  ;;  %v2111_v24 = vld [vmem:[%s2008_s10 + $0xc8] sm:$0xff]  ;;  %v2114_v25 = vld [vmem:[%s2008_s10 + $0xc0] sm:$0xff]  ;;  %p1760_p3 = pnand %p1759_p1, %p1753_p0 }
  0x50   : > { %287 = vadd.xlane.f32.xlu1 %v2039_v6  ;;  %285 = vadd.xlane.f32.xlu0 %v2042_v7  ;;  %3836 = vst [vmem:[#allocation33_spill] sm:$0xff] %v2111_v24  ;;  %3837 = vst [vmem:[#allocation34_spill] sm:$0xff] %v2114_v25  ;;  %v2119_v26 = vld [vmem:[%s2008_s10 + $0xd8] sm:$0xff]  ;;  %v2122_v27 = vld [vmem:[%s2008_s10 + $0xd0] sm:$0xff] }
  0x51   : > { %3838 = vst [vmem:[#allocation35_spill] sm:$0xff] %v2119_v26  ;;  %3839 = vst [vmem:[#allocation36_spill] sm:$0xff] %v2122_v27  ;;  %v2127_v28 = vld [vmem:[%s2008_s10 + $0xe8] sm:$0xff]  ;;  %v2130_v29 = vld [vmem:[%s2008_s10 + $0xe0] sm:$0xff] }
  0x52   : > { %3840 = vst [vmem:[#allocation37_spill] sm:$0xff] %v2127_v28  ;;  %3841 = vst [vmem:[#allocation38_spill] sm:$0xff] %v2130_v29  ;;  %v2135_v30 = vld [vmem:[%s2008_s10 + $0xf8] sm:$0xff]  ;;  %v2138_v31 = vld [vmem:[%s2008_s10 + $0xf0] sm:$0xff] }
  0x53   : > { %3842 = vst [vmem:[#allocation39_spill] sm:$0xff] %v2135_v30  ;;  %3843 = vst [vmem:[#allocation40_spill] sm:$0xff] %v2138_v31  ;;  %v2143_v32 = vld [vmem:[%s2008_s10 + $0x108] sm:$0xff]  ;;  %v2146_v33 = vld [vmem:[%s2008_s10 + $0x100] sm:$0xff] }
  0x54   : > { %291 = vadd.xlane.f32.xlu1 %v2047_v8  ;;  %289 = vadd.xlane.f32.xlu0 %v2050_v9  ;;  %3844 = vst [vmem:[#allocation41_spill] sm:$0xff] %v2143_v32  ;;  %3845 = vst [vmem:[#allocation42_spill] sm:$0xff] %v2146_v33  ;;  %v2151_v34 = vld [vmem:[%s2008_s10 + $0x118] sm:$0xff]  ;;  %v2154_v35 = vld [vmem:[%s2008_s10 + $0x110] sm:$0xff] }
  0x55   : > { %3846 = vst [vmem:[#allocation43_spill] sm:$0xff] %v2151_v34  ;;  %3847 = vst [vmem:[#allocation44_spill] sm:$0xff] %v2154_v35  ;;  %v2159_v36 = vld [vmem:[%s2008_s10 + $0x128] sm:$0xff]  ;;  %v2162_v37 = vld [vmem:[%s2008_s10 + $0x120] sm:$0xff] }
  0x56   : > { %3848 = vst [vmem:[#allocation45_spill] sm:$0xff] %v2159_v36  ;;  %3849 = vst [vmem:[#allocation46_spill] sm:$0xff] %v2162_v37  ;;  %v2167_v38 = vld [vmem:[%s2008_s10 + $0x138] sm:$0xff]  ;;  %v2170_v39 = vld [vmem:[%s2008_s10 + $0x130] sm:$0xff] }
  0x57   : > { %3850 = vst [vmem:[#allocation47_spill] sm:$0xff] %v2167_v38  ;;  %3851 = vst [vmem:[#allocation48_spill] sm:$0xff] %v2170_v39  ;;  %v2175_v40 = vld [vmem:[%s2008_s10 + $0x148] sm:$0xff]  ;;  %v2178_v41 = vld [vmem:[%s2008_s10 + $0x140] sm:$0xff] }
  0x58   : > { %295 = vadd.xlane.f32.xlu1 %v2055_v10  ;;  %293 = vadd.xlane.f32.xlu0 %v2058_v11  ;;  %3852 = vst [vmem:[#allocation49_spill] sm:$0xff] %v2175_v40  ;;  %3853 = vst [vmem:[#allocation50_spill] sm:$0xff] %v2178_v41  ;;  %v2183_v42 = vld [vmem:[%s2008_s10 + $0x158] sm:$0xff]  ;;  %v2186_v43 = vld [vmem:[%s2008_s10 + $0x150] sm:$0xff] }
  0x59   : > { %3854 = vst [vmem:[#allocation51_spill] sm:$0xff] %v2183_v42  ;;  %3855 = vst [vmem:[#allocation52_spill] sm:$0xff] %v2186_v43  ;;  %v2191_v44 = vld [vmem:[%s2008_s10 + $0x168] sm:$0xff]  ;;  %v2194_v45 = vld [vmem:[%s2008_s10 + $0x160] sm:$0xff] }
  0x5a   : > { %3856 = vst [vmem:[#allocation53_spill] sm:$0xff] %v2191_v44  ;;  %3857 = vst [vmem:[#allocation54_spill] sm:$0xff] %v2194_v45  ;;  %v2199_v46 = vld [vmem:[%s2008_s10 + $0x178] sm:$0xff]  ;;  %v2202_v47 = vld [vmem:[%s2008_s10 + $0x170] sm:$0xff] }
  0x5b   : > { %3858 = vst [vmem:[#allocation55_spill] sm:$0xff] %v2199_v46  ;;  %3859 = vst [vmem:[#allocation56_spill] sm:$0xff] %v2202_v47  ;;  %v2207_v48 = vld [vmem:[%s2008_s10 + $0x188] sm:$0xff]  ;;  %v2210_v49 = vld [vmem:[%s2008_s10 + $0x180] sm:$0xff] }
  0x5c   : > { %299 = vadd.xlane.f32.xlu1 %v2063_v12  ;;  %297 = vadd.xlane.f32.xlu0 %v2066_v13  ;;  %3860 = vst [vmem:[#allocation57_spill] sm:$0xff] %v2207_v48  ;;  %3861 = vst [vmem:[#allocation58_spill] sm:$0xff] %v2210_v49  ;;  %v2215_v50 = vld [vmem:[%s2008_s10 + $0x198] sm:$0xff]  ;;  %v2218_v51 = vld [vmem:[%s2008_s10 + $0x190] sm:$0xff] }
  0x5d   : > { %3862 = vst [vmem:[#allocation59_spill] sm:$0xff] %v2215_v50  ;;  %3863 = vst [vmem:[#allocation60_spill] sm:$0xff] %v2218_v51  ;;  %v2223_v52 = vld [vmem:[%s2008_s10 + $0x1a8] sm:$0xff]  ;;  %v2226_v53 = vld [vmem:[%s2008_s10 + $0x1a0] sm:$0xff] }
  0x5e   : > { %3864 = vst [vmem:[#allocation61_spill] sm:$0xff] %v2223_v52  ;;  %3865 = vst [vmem:[#allocation62_spill] sm:$0xff] %v2226_v53  ;;  %v2231_v54 = vld [vmem:[%s2008_s10 + $0x1b8] sm:$0xff]  ;;  %v2234_v55 = vld [vmem:[%s2008_s10 + $0x1b0] sm:$0xff] }
  0x5f   : > { %3866 = vst [vmem:[#allocation63_spill] sm:$0xff] %v2231_v54  ;;  %3867 = vst [vmem:[#allocation64_spill] sm:$0xff] %v2234_v55  ;;  %v2239_v56 = vld [vmem:[%s2008_s10 + $0x1c8] sm:$0xff]  ;;  %v2242_v57 = vld [vmem:[%s2008_s10 + $0x1c0] sm:$0xff] }
  0x60   : > { %303 = vadd.xlane.f32.xlu1 %v2071_v14  ;;  %301 = vadd.xlane.f32.xlu0 %v2074_v15  ;;  %v2247_v58 = vld [vmem:[%s2008_s10 + $0x1d8] sm:$0xff]  ;;  %v2250_v59 = vld [vmem:[%s2008_s10 + $0x1d0] sm:$0xff]  ;;  %v2255_v60 = vld [vmem:[%s2008_s10 + $0x1e8] sm:$0xff] }
  0x61   : > { %3868 = vst [vmem:[#allocation65_spill] sm:$0xff] %v2247_v58  ;;  %3869 = vst [vmem:[#allocation66_spill] sm:$0xff] %v2250_v59  ;;  %v2258_v61 = vld [vmem:[%s2008_s10 + $0x1e0] sm:$0xff]  ;;  %v2263_v62 = vld [vmem:[%s2008_s10 + $0x1f8] sm:$0xff] }
  0x62   : > { %3870 = vst [vmem:[#allocation67_spill] sm:$0xff] %v2255_v60  ;;  %3871 = vst [vmem:[#allocation68_spill] sm:$0xff] %v2258_v61  ;;  %v2266_v63 = vld [vmem:[%s2008_s10 + $0x1f0] sm:$0xff] }
  0x63   : > { %3872 = vst [vmem:[#allocation69_spill] sm:$0xff] %v2263_v62  ;;  %3873 = vst [vmem:[#allocation70_spill] sm:$0xff] %v2266_v63 }
  0x64   : > { %307 = vadd.xlane.f32.xlu1 %v2079_v16  ;;  %305 = vadd.xlane.f32.xlu0 %v2082_v17 }
  0x68   : > { %311 = vadd.xlane.f32.xlu1 %v2087_v18  ;;  %309 = vadd.xlane.f32.xlu0 %v2090_v19 }
  0x6c   : > { %315 = vadd.xlane.f32.xlu1 %v2095_v20  ;;  %313 = vadd.xlane.f32.xlu0 %v2098_v21 }
  0x70   : > { %319 = vadd.xlane.f32.xlu1 %v2103_v22  ;;  %317 = vadd.xlane.f32.xlu0 %v2106_v23 }
  0x74   : > { %323 = vadd.xlane.f32.xlu1 %v2111_v24  ;;  %321 = vadd.xlane.f32.xlu0 %v2114_v25 }
  0x78   : > { %327 = vadd.xlane.f32.xlu1 %v2119_v26  ;;  %325 = vadd.xlane.f32.xlu0 %v2122_v27 }
  0x7c   : > { %331 = vadd.xlane.f32.xlu1 %v2127_v28  ;;  %329 = vadd.xlane.f32.xlu0 %v2130_v29 }
  0x80   : > { %335 = vadd.xlane.f32.xlu1 %v2135_v30  ;;  %333 = vadd.xlane.f32.xlu0 %v2138_v31 }
  0x84   : > { %339 = vadd.xlane.f32.xlu1 %v2143_v32  ;;  %337 = vadd.xlane.f32.xlu0 %v2146_v33 }
  0x88   : > { %343 = vadd.xlane.f32.xlu1 %v2151_v34  ;;  %341 = vadd.xlane.f32.xlu0 %v2154_v35 }
  0x8c   : > { %347 = vadd.xlane.f32.xlu1 %v2159_v36  ;;  %345 = vadd.xlane.f32.xlu0 %v2162_v37 }
  0x90   : > { %351 = vadd.xlane.f32.xlu1 %v2167_v38  ;;  %349 = vadd.xlane.f32.xlu0 %v2170_v39 }
  0x94   : > { %355 = vadd.xlane.f32.xlu1 %v2175_v40  ;;  %353 = vadd.xlane.f32.xlu0 %v2178_v41 }
  0x98   : > { %359 = vadd.xlane.f32.xlu1 %v2183_v42  ;;  %357 = vadd.xlane.f32.xlu0 %v2186_v43 }
  0x9c   : > { %363 = vadd.xlane.f32.xlu1 %v2191_v44  ;;  %361 = vadd.xlane.f32.xlu0 %v2194_v45 }
  0xa0   : > { %367 = vadd.xlane.f32.xlu1 %v2199_v46  ;;  %365 = vadd.xlane.f32.xlu0 %v2202_v47 }
  0xa4   : > { %371 = vadd.xlane.f32.xlu1 %v2207_v48  ;;  %369 = vadd.xlane.f32.xlu0 %v2210_v49 }
  0xa8   : > { %375 = vadd.xlane.f32.xlu1 %v2215_v50  ;;  %373 = vadd.xlane.f32.xlu0 %v2218_v51 }
  0xac   : > { %379 = vadd.xlane.f32.xlu1 %v2223_v52  ;;  %377 = vadd.xlane.f32.xlu0 %v2226_v53 }
  0xb0   : > { %383 = vadd.xlane.f32.xlu1 %v2231_v54  ;;  %381 = vadd.xlane.f32.xlu0 %v2234_v55 }
  0xb4   : > { %387 = vadd.xlane.f32.xlu1 %v2239_v56  ;;  %385 = vadd.xlane.f32.xlu0 %v2242_v57 }
  0xb8   : > { %391 = vadd.xlane.f32.xlu1 %v2247_v58  ;;  %389 = vadd.xlane.f32.xlu0 %v2250_v59  ;;  %v402_v58 = vmul.f32 %v2026_v3, %v2026_v3  ;;  %v401_v59 = vmul.f32 %v2018_v1, %v2018_v1 }
  0xbc   : > { %395 = vadd.xlane.f32.xlu1 %v2255_v60  ;;  %393 = vadd.xlane.f32.xlu0 %v2258_v61  ;;  %v404_v60 = vmul.f32 %v2023_v2, %v2023_v2  ;;  %v403_v61 = vmul.f32 %v2015_v0, %v2015_v0 }
  0xc0   : > { %399 = vadd.xlane.f32.xlu1 %v2263_v62  ;;  %397 = vadd.xlane.f32.xlu0 %v2266_v63  ;;  %v406_v62 = vmul.f32 %v2031_v4, %v2031_v4  ;;  %v405_v63 = vmul.f32 %v2034_v5, %v2034_v5  ;;  %v409_v5 = vmul.f32 %v2050_v9, %v2050_v9 }
  0xc4   : > { %467 = vadd.xlane.f32.xlu1 %v402_v58  ;;  %465 = vadd.xlane.f32.xlu0 %v401_v59  ;;  %v408_v58 = vmul.f32 %v2039_v6, %v2039_v6  ;;  %v407_v59 = vmul.f32 %v2042_v7, %v2042_v7 }
  0xc8   : > { %471 = vadd.xlane.f32.xlu1 %v404_v60  ;;  %469 = vadd.xlane.f32.xlu0 %v403_v61  ;;  %v410_v60 = vmul.f32 %v2047_v8, %v2047_v8 }
  0xcc   : > { %475 = vadd.xlane.f32.xlu1 %v406_v62  ;;  %473 = vadd.xlane.f32.xlu0 %v405_v63  ;;  %v412_v62 = vmul.f32 %v2055_v10, %v2055_v10 }
  0xd0   : > { %479 = vadd.xlane.f32.xlu1 %v408_v58  ;;  %477 = vadd.xlane.f32.xlu0 %v407_v59  ;;  %v411_v58 = vmul.f32 %v2058_v11, %v2058_v11  ;;  %v414_v59 = vmul.f32 %v2063_v12, %v2063_v12 }
  0xd1   : > { %v2288_v61 = vpop.xlane.xlu1 %277  ;;  %v2290_v3 = vpop.xlane.xlu0 %273 }
  0xd4   : > { %483 = vadd.xlane.f32.xlu1 %v410_v60  ;;  %481 = vadd.xlane.f32.xlu0 %v409_v5  ;;  %v413_v60 = vmul.f32 %v2066_v13, %v2066_v13  ;;  %v416_v5 = vmul.f32 %v2071_v14, %v2071_v14 }
  0xd5   : > { %v2296_v63 = vpop.xlane.xlu1 %279  ;;  %v2298_v7 = vpop.xlane.xlu0 %275 }
  0xd8   : > { %487 = vadd.xlane.f32.xlu1 %v412_v62  ;;  %485 = vadd.xlane.f32.xlu0 %v411_v58  ;;  %v415_v62 = vmul.f32 %v2074_v15, %v2074_v15  ;;  %v418_v58 = vmul.f32 %v2079_v16, %v2079_v16 }
  0xd9   : > { %v2304_v8 = vpop.xlane.xlu1 %283  ;;  %v2306_v9 = vpop.xlane.xlu0 %281 }
  0xdc   : > { %491 = vadd.xlane.f32.xlu1 %v414_v59  ;;  %489 = vadd.xlane.f32.xlu0 %v413_v60  ;;  %v417_v59 = vmul.f32 %v2082_v17, %v2082_v17  ;;  %v420_v60 = vmul.f32 %v2087_v18, %v2087_v18 }
  0xdd   : > { %v2312_v10 = vpop.xlane.xlu1 %287  ;;  %v2314_v11 = vpop.xlane.xlu0 %285 }
  0xe0   : > { %495 = vadd.xlane.f32.xlu1 %v416_v5  ;;  %493 = vadd.xlane.f32.xlu0 %v415_v62  ;;  %v419_v5 = vmul.f32 %v2090_v19, %v2090_v19  ;;  %v422_v62 = vmul.f32 %v2095_v20, %v2095_v20 }
  0xe1   : > { %v2320_v12 = vpop.xlane.xlu1 %291  ;;  %v2322_v13 = vpop.xlane.xlu0 %289 }
  0xe4   : > { %499 = vadd.xlane.f32.xlu1 %v418_v58  ;;  %497 = vadd.xlane.f32.xlu0 %v417_v59  ;;  %v421_v58 = vmul.f32 %v2098_v21, %v2098_v21  ;;  %v424_v59 = vmul.f32 %v2103_v22, %v2103_v22 }
  0xe5   : > { %v2328_v14 = vpop.xlane.xlu1 %295  ;;  %v2330_v15 = vpop.xlane.xlu0 %293 }
  0xe6   : > { %v2571_v2 = vmul.f32 0.0078125, %v2328_v14 }
  0xe8   : > { %503 = vadd.xlane.f32.xlu1 %v420_v60  ;;  %501 = vadd.xlane.f32.xlu0 %v419_v5  ;;  %v423_v60 = vmul.f32 %v2106_v23, %v2106_v23  ;;  %v426_v5 = vmul.f32 %v2111_v24, %v2111_v24  ;;  %3897 = vst [vmem:[#allocation80_spill] sm:$0xff] %v2571_v2 }
  0xe9   : > { %v2336_v16 = vpop.xlane.xlu1 %299  ;;  %v2338_v17 = vpop.xlane.xlu0 %297 }
  0xec   : > { %507 = vadd.xlane.f32.xlu1 %v422_v62  ;;  %505 = vadd.xlane.f32.xlu0 %v421_v58  ;;  %v425_v62 = vmul.f32 %v2114_v25, %v2114_v25  ;;  %v428_v58 = vmul.f32 %v2119_v26, %v2119_v26 }
  0xed   : > { %v2344_v18 = vpop.xlane.xlu1 %303  ;;  %v2346_v19 = vpop.xlane.xlu0 %301 }
  0xee   : > { %v2622_v4 = vmul.f32 0.0078125, %v2346_v19 }
  0xf0   : > { %511 = vadd.xlane.f32.xlu1 %v424_v59  ;;  %509 = vadd.xlane.f32.xlu0 %v423_v60  ;;  %v427_v59 = vmul.f32 %v2122_v27, %v2122_v27  ;;  %v430_v60 = vmul.f32 %v2127_v28, %v2127_v28  ;;  %3907 = vst [vmem:[#allocation85_spill] sm:$0xff] %v2622_v4 }
  0xf1   : > { %v2352_v20 = vpop.xlane.xlu1 %307  ;;  %v2354_v21 = vpop.xlane.xlu0 %305 }
  0xf4   : > { %515 = vadd.xlane.f32.xlu1 %v426_v5  ;;  %513 = vadd.xlane.f32.xlu0 %v425_v62  ;;  %v429_v5 = vmul.f32 %v2130_v29, %v2130_v29  ;;  %v432_v62 = vmul.f32 %v2135_v30, %v2135_v30 }
  0xf5   : > { %v2360_v22 = vpop.xlane.xlu1 %311  ;;  %v2362_v23 = vpop.xlane.xlu0 %309 }
  0xf6   : > { %v2662_v19 = vmul.f32 0.0078125, %v2362_v23 }
  0xf8   : > { %519 = vadd.xlane.f32.xlu1 %v428_v58  ;;  %517 = vadd.xlane.f32.xlu0 %v427_v59  ;;  %v431_v58 = vmul.f32 %v2138_v31, %v2138_v31  ;;  %v434_v59 = vmul.f32 %v2143_v32, %v2143_v32  ;;  %3915 = vst [vmem:[#allocation89_spill] sm:$0xff] %v2662_v19 }
  0xf9   : > { %v2368_v24 = vpop.xlane.xlu1 %315  ;;  %v2370_v25 = vpop.xlane.xlu0 %313 }
  0xfc   : > { %523 = vadd.xlane.f32.xlu1 %v430_v60  ;;  %521 = vadd.xlane.f32.xlu0 %v429_v5  ;;  %v433_v60 = vmul.f32 %v2146_v33, %v2146_v33  ;;  %v436_v5 = vmul.f32 %v2151_v34, %v2151_v34 }
  0xfd   : > { %v2376_v26 = vpop.xlane.xlu1 %319  ;;  %v2378_v27 = vpop.xlane.xlu0 %317 }
 0x100   : > { %527 = vadd.xlane.f32.xlu1 %v432_v62  ;;  %525 = vadd.xlane.f32.xlu0 %v431_v58  ;;  %v435_v62 = vmul.f32 %v2154_v35, %v2154_v35  ;;  %v438_v58 = vmul.f32 %v2159_v36, %v2159_v36 }
 0x101   : > { %v2384_v28 = vpop.xlane.xlu1 %323  ;;  %v2386_v29 = vpop.xlane.xlu0 %321 }
 0x104   : > { %531 = vadd.xlane.f32.xlu1 %v434_v59  ;;  %529 = vadd.xlane.f32.xlu0 %v433_v60  ;;  %v437_v59 = vmul.f32 %v2162_v37, %v2162_v37  ;;  %v440_v60 = vmul.f32 %v2167_v38, %v2167_v38 }
 0x105   : > { %v2392_v30 = vpop.xlane.xlu1 %327  ;;  %v2394_v31 = vpop.xlane.xlu0 %325 }
 0x106   : > { %v2729_v23 = vmul.f32 0.0078125, %v2392_v30 }
 0x108   : > { %535 = vadd.xlane.f32.xlu1 %v436_v5  ;;  %533 = vadd.xlane.f32.xlu0 %v435_v62  ;;  %v439_v5 = vmul.f32 %v2170_v39, %v2170_v39  ;;  %v442_v62 = vmul.f32 %v2175_v40, %v2175_v40  ;;  %3928 = vst [vmem:[#allocation96_spill] sm:$0xff] %v2729_v23 }
 0x109   : > { %v2400_v32 = vpop.xlane.xlu1 %331  ;;  %v2402_v33 = vpop.xlane.xlu0 %329 }
 0x10c   : > { %539 = vadd.xlane.f32.xlu1 %v438_v58  ;;  %537 = vadd.xlane.f32.xlu0 %v437_v59  ;;  %v441_v58 = vmul.f32 %v2178_v41, %v2178_v41  ;;  %v444_v59 = vmul.f32 %v2183_v42, %v2183_v42 }
 0x10d   : > { %v2408_v34 = vpop.xlane.xlu1 %335  ;;  %v2410_v35 = vpop.xlane.xlu0 %333 }
 0x110   : > { %543 = vadd.xlane.f32.xlu1 %v440_v60  ;;  %541 = vadd.xlane.f32.xlu0 %v439_v5  ;;  %v443_v60 = vmul.f32 %v2186_v43, %v2186_v43  ;;  %v446_v5 = vmul.f32 %v2191_v44, %v2191_v44 }
 0x111   : > { %v2416_v36 = vpop.xlane.xlu1 %339  ;;  %v2418_v37 = vpop.xlane.xlu0 %337 }
 0x114   : > { %547 = vadd.xlane.f32.xlu1 %v442_v62  ;;  %545 = vadd.xlane.f32.xlu0 %v441_v58  ;;  %v445_v62 = vmul.f32 %v2194_v45, %v2194_v45  ;;  %v448_v58 = vmul.f32 %v2199_v46, %v2199_v46 }
 0x115   : > { %v2424_v38 = vpop.xlane.xlu1 %343  ;;  %v2426_v39 = vpop.xlane.xlu0 %341 }
 0x116   : > { %v2807_v30 = vmul.f32 0.0078125, %v2424_v38 }
 0x118   : > { %551 = vadd.xlane.f32.xlu1 %v444_v59  ;;  %549 = vadd.xlane.f32.xlu0 %v443_v60  ;;  %v447_v59 = vmul.f32 %v2202_v47, %v2202_v47  ;;  %v450_v60 = vmul.f32 %v2207_v48, %v2207_v48  ;;  %3946 = vst [vmem:[#allocation106_spill] sm:$0xff] %v2807_v30 }
 0x119   : > { %v2432_v40 = vpop.xlane.xlu1 %347  ;;  %v2434_v41 = vpop.xlane.xlu0 %345 }
 0x11c   : > { %555 = vadd.xlane.f32.xlu1 %v446_v5  ;;  %553 = vadd.xlane.f32.xlu0 %v445_v62  ;;  %v449_v5 = vmul.f32 %v2210_v49, %v2210_v49  ;;  %v452_v62 = vmul.f32 %v2215_v50, %v2215_v50  ;;  %v2474_v50 = vmul.f32 0.0078125, %v2290_v3  ;;  %v457_v3 = vmul.f32 %v2242_v57, %v2242_v57 }
 0x11d   : > { %v2440_v42 = vpop.xlane.xlu1 %351  ;;  %v2442_v43 = vpop.xlane.xlu0 %349  ;;  %v2510_v57 = vmul.f32 0.0078125, %v2306_v9  ;;  %v2531_v9 = vmul.f32 0.0078125, %v2312_v10 }
 0x11e   : > { %3878 = vst [vmem:[#allocation75_spill] sm:$0xff] %v2474_v50 }
 0x120   : > { %559 = vadd.xlane.f32.xlu1 %v448_v58  ;;  %557 = vadd.xlane.f32.xlu0 %v447_v59  ;;  %v451_v58 = vmul.f32 %v2218_v51, %v2218_v51  ;;  %v454_v59 = vmul.f32 %v2223_v52, %v2223_v52  ;;  %v2481_v52 = vmul.f32 0.0078125, %v2296_v63 }
 0x121   : > { %v2448_v44 = vpop.xlane.xlu1 %355  ;;  %v2450_v45 = vpop.xlane.xlu0 %353 }
 0x122   : > { %3879 = vst [vmem:[#allocation76_spill] sm:$0xff] %v2481_v52 }
 0x124   : > { %563 = vadd.xlane.f32.xlu1 %v450_v60  ;;  %561 = vadd.xlane.f32.xlu0 %v449_v5  ;;  %v453_v60 = vmul.f32 %v2226_v53, %v2226_v53  ;;  %v2471_v5 = vmul.f32 0.0078125, %v2288_v61  ;;  %v458_v61 = vmul.f32 %v2239_v56, %v2239_v56  ;;  %v2507_v56 = vmul.f32 0.0078125, %v2304_v8 }
 0x125   : > { %v2456_v46 = vpop.xlane.xlu1 %359  ;;  %v2458_v47 = vpop.xlane.xlu0 %357  ;;  %v2528_v8 = vmul.f32 %v2474_v50, %v2474_v50  ;;  %v2555_v50 = vmul.f32 0.0078125, %v2320_v12 }
 0x126   : > { %3874 = vst [vmem:[#allocation71_spill] sm:$0xff] %v2458_v47  ;;  %3877 = vst [vmem:[#allocation74_spill] sm:$0xff] %v2471_v5  ;;  %v3890_v47 = vld [vmem:[#allocation70_spill] sm:$0xff] }
 0x128   : > { %567 = vadd.xlane.f32.xlu1 %v452_v62  ;;  %565 = vadd.xlane.f32.xlu0 %v451_v58  ;;  %v456_v62 = vmul.f32 %v2231_v54, %v2231_v54  ;;  %v455_v58 = vmul.f32 %v2234_v55, %v2234_v55  ;;  %v3884_v55 = vld [vmem:[#allocation66_spill] sm:$0xff] }
 0x129   : > { %v2464_v48 = vpop.xlane.xlu1 %363  ;;  %v2466_v49 = vpop.xlane.xlu0 %361  ;;  %v459_v63 = vmul.f32 %v3884_v55, %v3884_v55  ;;  %3887 = vst [vmem:[#allocation66_spill] sm:$0xff] %v2507_v56  ;;  %v2518_v55 = vmul.f32 %v3890_v47, %v3890_v47  ;;  %v2537_v47 = vmul.f32 %v2481_v52, %v2481_v52  ;;  %v2568_v52 = vmul.f32 %v2510_v57, %v2510_v57 }
 0x12a   : > { %3875 = vst [vmem:[#allocation72_spill] sm:$0xff] %v2464_v48  ;;  %3876 = vst [vmem:[#allocation73_spill] sm:$0xff] %v2466_v49  ;;  %v2494_v49 = vmul.f32 0.0078125, %v2298_v7 }
 0x12c   : > { %571 = vadd.xlane.f32.xlu1 %v454_v59  ;;  %569 = vadd.xlane.f32.xlu0 %v453_v60  ;;  %v3882_v59 = vld [vmem:[#allocation65_spill] sm:$0xff]  ;;  %v3885_v60 = vld [vmem:[#allocation67_spill] sm:$0xff]  ;;  %v2550_v10 = vmul.f32 %v2494_v49, %v2494_v49 }
 0x12d   : > { %v2483_v51 = vpop.xlane.xlu1 %367  ;;  %v2485_v53 = vpop.xlane.xlu0 %365  ;;  %v460_v54 = vmul.f32 %v3882_v59, %v3882_v59  ;;  %3883 = vst [vmem:[#allocation65_spill] sm:$0xff] %v2494_v49  ;;  %3888 = vst [vmem:[#allocation67_spill] sm:$0xff] %v2510_v57  ;;  %v3889_v59 = vld [vmem:[#allocation69_spill] sm:$0xff]  ;;  %v2582_v49 = vmul.f32 0.0078125, %v2330_v15  ;;  %v2594_v57 = vmul.f32 0.0078125, %v2338_v17  ;;  %v2602_v15 = vmul.f32 %v2555_v50, %v2555_v50 }
 0x12e   : > { %3880 = vst [vmem:[#allocation77_spill] sm:$0xff] %v2483_v51  ;;  %3881 = vst [vmem:[#allocation78_spill] sm:$0xff] %v2485_v53  ;;  %v2500_v51 = vmul.f32 %v3885_v60, %v3885_v60  ;;  %v3886_v53 = vld [vmem:[#allocation68_spill] sm:$0xff]  ;;  %v2514_v7 = vmul.f32 %v3889_v59, %v3889_v59  ;;  %v2522_v60 = vmul.f32 %v2471_v5, %v2471_v5  ;;  %v2591_v59 = vmul.f32 0.0078125, %v2336_v16 }
 0x12f   : > { %v2504_v48 = vmul.f32 %v3886_v53, %v3886_v53  ;;  %3892 = vst [vmem:[#allocation69_spill] sm:$0xff] %v2531_v9  ;;  %v2542_v53 = vmul.f32 0.0078125, %v2314_v11  ;;  %v2562_v11 = vmul.f32 %v2507_v56, %v2507_v56  ;;  %3899 = vst [vmem:[#allocation81_spill] sm:$0xff] %v2582_v49  ;;  %v2611_v16 = vmul.f32 0.0078125, %v2344_v18 }
 0x130   : > { %3891 = vst [vmem:[#allocation68_spill] sm:$0xff] %v2522_v60  ;;  %575 = vadd.xlane.f32.xlu1 %v456_v62  ;;  %573 = vadd.xlane.f32.xlu0 %v455_v58  ;;  %v3894_v62 = vld [vmem:[#allocation12_spill] sm:$0xff]  ;;  %v2558_v60 = vmul.f32 0.0078125, %v2322_v13  ;;  %v2577_v13 = vmul.f32 %v2531_v9, %v2531_v9  ;;  %3901 = vst [vmem:[#allocation82_spill] sm:$0xff] %v2591_v59  ;;  %v2626_v9 = vmul.f32 %v2582_v49, %v2582_v49 }
 0x131   : > { %3893 = vst [vmem:[#allocation70_spill] sm:$0xff] %v2542_v53  ;;  %v2544_v5 = vpop.xlane.xlu1 %371  ;;  %v2546_v0 = vpop.xlane.xlu0 %369  ;;  %3895 = vst [vmem:[#allocation12_spill] sm:$0xff] %v2555_v50  ;;  %v2586_v58 = vmul.f32 %v2542_v53, %v2542_v53  ;;  %v2617_v53 = vmul.f32 %v2571_v2, %v2571_v2  ;;  %v2638_v6 = vmul.f32 %v2591_v59, %v2591_v59  ;;  %v2647_v50 = vmul.f32 0.0078125, %v2360_v22 }
 0x132   : > { %3896 = vst [vmem:[#allocation79_spill] sm:$0xff] %v2558_v60  ;;  %3902 = vst [vmem:[#allocation83_spill] sm:$0xff] %v2594_v57  ;;  %v2608_v56 = vmul.f32 %v2558_v60, %v2558_v60  ;;  %v2644_v14 = vmul.f32 %v2594_v57, %v2594_v57  ;;  %v2657_v18 = vmul.f32 %v2611_v16, %v2611_v16  ;;  %v2671_v17 = vmul.f32 0.0078125, %v2368_v24 }
 0x133   : > { %3904 = vst [vmem:[#allocation84_spill] sm:$0xff] %v2611_v16  ;;  %3912 = vst [vmem:[#allocation88_spill] sm:$0xff] %v2647_v50  ;;  %v2666_v22 = vmul.f32 %v2622_v4, %v2622_v4  ;;  %v2674_v49 = vmul.f32 0.0078125, %v2370_v25  ;;  %v2687_v2 = vmul.f32 0.0078125, %v2376_v26  ;;  %v2694_v60 = vmul.f32 %v2647_v50, %v2647_v50 }
 0x134   : > { %579 = vadd.xlane.f32.xlu1 %v458_v61  ;;  %577 = vadd.xlane.f32.xlu0 %v457_v3  ;;  %v2631_v61 = vmul.f32 0.0078125, %v2352_v20  ;;  %v2634_v3 = vmul.f32 0.0078125, %v2354_v21  ;;  %3917 = vst [vmem:[#allocation90_spill] sm:$0xff] %v2671_v17  ;;  %v2699_v59 = vmul.f32 0.0078125, %v2378_v27  ;;  %v2713_v24 = vmul.f32 0.0078125, %v2384_v28 }
 0x135   : > { %v2596_v12 = vpop.xlane.xlu1 %375  ;;  %v2598_v1 = vpop.xlane.xlu0 %373  ;;  %3918 = vst [vmem:[#allocation91_spill] sm:$0xff] %v2674_v49  ;;  %3920 = vst [vmem:[#allocation92_spill] sm:$0xff] %v2687_v2  ;;  %v2720_v27 = vmul.f32 %v2671_v17, %v2671_v17  ;;  %v2726_v4 = vmul.f32 %v2674_v49, %v2674_v49  ;;  %v2753_v49 = vmul.f32 0.0078125, %v2402_v33  ;;  %v2771_v33 = vmul.f32 0.0078125, %v2408_v34 }
 0x136   : > { %3909 = vst [vmem:[#allocation86_spill] sm:$0xff] %v2631_v61  ;;  %3910 = vst [vmem:[#allocation87_spill] sm:$0xff] %v2634_v3  ;;  %v2678_v57 = vmul.f32 %v2631_v61, %v2631_v61  ;;  %v2684_v16 = vmul.f32 %v2634_v3, %v2634_v3  ;;  %v2745_v50 = vmul.f32 %v2699_v59, %v2699_v59  ;;  %v2750_v3 = vmul.f32 0.0078125, %v2400_v32 }
 0x137   : > { %3923 = vst [vmem:[#allocation93_spill] sm:$0xff] %v2699_v59  ;;  %3925 = vst [vmem:[#allocation94_spill] sm:$0xff] %v2713_v24  ;;  %v2777_v59 = vmul.f32 %v2729_v23, %v2729_v23  ;;  %v2794_v17 = vmul.f32 0.0078125, %v2418_v37  ;;  %v2804_v23 = vmul.f32 %v2753_v49, %v2753_v49  ;;  %v2817_v34 = vmul.f32 %v2771_v33, %v2771_v33 }
 0x138   : > { %583 = vadd.xlane.f32.xlu1 %v460_v54  ;;  %581 = vadd.xlane.f32.xlu0 %v459_v63  ;;  %v2716_v63 = vmul.f32 0.0078125, %v2386_v29  ;;  %v2735_v29 = vmul.f32 %v2687_v2, %v2687_v2  ;;  %v2740_v54 = vmul.f32 0.0078125, %v2394_v31  ;;  %3933 = vst [vmem:[#allocation98_spill] sm:$0xff] %v2750_v3  ;;  %3934 = vst [vmem:[#allocation99_spill] sm:$0xff] %v2753_v49  ;;  %v2791_v2 = vmul.f32 0.0078125, %v2416_v36 }
 0x139   : > { %v2649_v20 = vpop.xlane.xlu1 %379  ;;  %v2651_v21 = vpop.xlane.xlu0 %377  ;;  %3936 = vst [vmem:[#allocation100_spill] sm:$0xff] %v2771_v33  ;;  %3942 = vst [vmem:[#allocation103_spill] sm:$0xff] %v2794_v17  ;;  %v2844_v33 = vmul.f32 %v2794_v17, %v2794_v17  ;;  %v2847_v28 = vmul.f32 0.0078125, %v2440_v42  ;;  %v2858_v37 = vmul.f32 0.0078125, %v2442_v43 }
 0x13a   : > { %3926 = vst [vmem:[#allocation95_spill] sm:$0xff] %v2716_v63  ;;  %3931 = vst [vmem:[#allocation97_spill] sm:$0xff] %v2740_v54  ;;  %v2768_v32 = vmul.f32 %v2716_v63, %v2716_v63  ;;  %v2798_v63 = vmul.f32 %v2750_v3, %v2750_v3  ;;  %v2838_v49 = vmul.f32 %v2791_v2, %v2791_v2 }
 0x13b   : > { %3941 = vst [vmem:[#allocation102_spill] sm:$0xff] %v2791_v2  ;;  %3945 = vst [vmem:[#allocation105_spill] sm:$0xff] %v2804_v23 }
 0x13c   : > { %587 = vadd.xlane.f32.xlu1 %v2500_v51  ;;  %585 = vadd.xlane.f32.xlu0 %v2504_v48  ;;  %v2708_v51 = vmul.f32 %v2662_v19, %v2662_v19  ;;  %v2782_v48 = vmul.f32 0.0078125, %v2410_v35  ;;  %v2786_v19 = vmul.f32 %v2740_v54, %v2740_v54  ;;  %3943 = vst [vmem:[#allocation104_spill] sm:$0xff] %v2798_v63  ;;  %v2822_v35 = vmul.f32 0.0078125, %v2426_v39 }
 0x13d   : > { %v2702_v61 = vpop.xlane.xlu1 %383  ;;  %v2704_v26 = vpop.xlane.xlu0 %381  ;;  %v2831_v63 = vmul.f32 0.0078125, %v2432_v40  ;;  %v2834_v54 = vmul.f32 0.0078125, %v2434_v41  ;;  %3953 = vst [vmem:[#allocation110_spill] sm:$0xff] %v2838_v49  ;;  %3955 = vst [vmem:[#allocation111_spill] sm:$0xff] %v2844_v33  ;;  %v2853_v41 = vmul.f32 %v2807_v30, %v2807_v30  ;;  %v2871_v40 = vmul.f32 0.0078125, %v2448_v44  ;;  %v3986_v33 = vld [vmem:[#allocation78_spill] sm:$0xff] }
 0x13e   : > { %3939 = vst [vmem:[#allocation101_spill] sm:$0xff] %v2782_v48  ;;  %3949 = vst [vmem:[#allocation107_spill] sm:$0xff] %v2822_v35  ;;  %v2826_v38 = vmul.f32 %v2782_v48, %v2782_v48  ;;  %v2866_v42 = vmul.f32 %v2822_v35, %v2822_v35  ;;  %v2874_v39 = vmul.f32 0.0078125, %v2450_v45  ;;  %v2893_v45 = vmul.f32 %v2847_v28, %v2847_v28  ;;  %v3971_v35 = vld [vmem:[#allocation71_spill] sm:$0xff] }
 0x13f   : > { %3951 = vst [vmem:[#allocation108_spill] sm:$0xff] %v2831_v63  ;;  %3952 = vst [vmem:[#allocation109_spill] sm:$0xff] %v2834_v54  ;;  %v2878_v43 = vmul.f32 %v2831_v63, %v2831_v63  ;;  %v2884_v48 = vmul.f32 %v2834_v54, %v2834_v54  ;;  %v2896_v23 = vmul.f32 0.0078125, %v3971_v35  ;;  %v3978_v54 = vld [vmem:[#allocation73_spill] sm:$0xff]  ;;  %v2938_v49 = vmul.f32 0.0078125, %v3986_v33 }
 0x140   : > { %591 = vadd.xlane.f32.xlu1 %v2514_v7  ;;  %589 = vadd.xlane.f32.xlu0 %v2518_v55  ;;  %v2762_v7 = vmul.f32 %v2713_v24, %v2713_v24  ;;  %3956 = vst [vmem:[#allocation112_spill] sm:$0xff] %v2847_v28  ;;  %3958 = vst [vmem:[#allocation113_spill] sm:$0xff] %v2853_v41  ;;  %v2910_v44 = vmul.f32 0.0078125, %v3978_v54  ;;  %v2924_v30 = vmul.f32 %v2874_v39, %v2874_v39 }
 0x141   : > { %v2756_v25 = vpop.xlane.xlu1 %387  ;;  %v2758_v31 = vpop.xlane.xlu0 %385  ;;  %3960 = vst [vmem:[#allocation114_spill] sm:$0xff] %v2858_v37  ;;  %3961 = vst [vmem:[#allocation115_spill] sm:$0xff] %v2866_v42  ;;  %v2887_v42 = vmul.f32 0.0078125, %v2456_v46  ;;  %v2905_v46 = vmul.f32 %v2858_v37, %v2858_v37  ;;  %v2942_v28 = vmul.f32 %v2896_v23, %v2896_v23 }
 0x142   : > { %3963 = vst [vmem:[#allocation116_spill] sm:$0xff] %v2871_v40  ;;  %3964 = vst [vmem:[#allocation117_spill] sm:$0xff] %v2874_v39  ;;  %v2951_v39 = vmul.f32 0.0078125, %v2544_v5  ;;  %v2957_v33 = vmul.f32 %v2910_v44, %v2910_v44 }
 0x143   : > { %3965 = vst [vmem:[#allocation118_spill] sm:$0xff] %v2878_v43  ;;  %3967 = vst [vmem:[#allocation119_spill] sm:$0xff] %v2884_v48  ;;  %v3973_v43 = vld [vmem:[#allocation72_spill] sm:$0xff]  ;;  %v2933_v55 = vmul.f32 %v2887_v42, %v2887_v42  ;;  %v2963_v48 = vmul.f32 0.0078125, %v2596_v12  ;;  %v3001_v12 = vmul.f32 0.0078125, %v2649_v20 }
 0x144   : > { %3968 = vst [vmem:[#allocation120_spill] sm:$0xff] %v2887_v42  ;;  %3970 = vst [vmem:[#allocation121_spill] sm:$0xff] %v2893_v45  ;;  %v2899_v41 = vmul.f32 0.0078125, %v3973_v43  ;;  %v2918_v43 = vmul.f32 %v2871_v40, %v2871_v40  ;;  %v2960_v42 = vmul.f32 0.0078125, %v2546_v0  ;;  %v2975_v0 = vmul.f32 %v2938_v49, %v2938_v49  ;;  %v4006_v20 = vld [vmem:[#allocation60_spill] sm:$0xff] }
 0x145   : > { %v2809_v24 = vpop.xlane.xlu1 %391  ;;  %v2811_v36 = vpop.xlane.xlu0 %389  ;;  %3972 = vst [vmem:[#allocation71_spill] sm:$0xff] %v2896_v23  ;;  %3976 = vst [vmem:[#allocation122_spill] sm:$0xff] %v2905_v46  ;;  %v3982_v46 = vld [vmem:[#allocation77_spill] sm:$0xff]  ;;  %v2984_v63 = vmul.f32 %v2951_v39, %v2951_v39 }
 0x146   : > { %3974 = vst [vmem:[#allocation72_spill] sm:$0xff] %v2899_v41  ;;  %3979 = vst [vmem:[#allocation73_spill] sm:$0xff] %v2910_v44  ;;  %v2927_v17 = vmul.f32 0.0078125, %v3982_v46  ;;  %v2948_v37 = vmul.f32 %v2899_v41, %v2899_v41 }
 0x147   : > { %3980 = vst [vmem:[#allocation123_spill] sm:$0xff] %v2918_v43  ;;  %3987 = vst [vmem:[#allocation78_spill] sm:$0xff] %v2938_v49  ;;  %v3010_v49 = vmul.f32 0.0078125, %v2651_v21  ;;  %v3026_v21 = vmul.f32 0.0078125, %v2704_v26  ;;  %v3039_v26 = vmul.f32 0.0078125, %v2756_v25 }
 0x148   : > { %3983 = vst [vmem:[#allocation77_spill] sm:$0xff] %v2927_v17  ;;  %3988 = vst [vmem:[#allocation124_spill] sm:$0xff] %v2942_v28  ;;  %v2969_v5 = vmul.f32 %v2927_v17, %v2927_v17  ;;  %v2980_v28 = vmul.f32 0.0078125, %v2598_v1  ;;  %v2992_v17 = vmul.f32 %v2960_v42, %v2960_v42  ;;  %v2998_v1 = vmul.f32 %v2963_v48, %v2963_v48 }
 0x149   : > { %v2860_v3 = vpop.xlane.xlu1 %395  ;;  %v2862_v2 = vpop.xlane.xlu0 %393  ;;  %3990 = vst [vmem:[#allocation125_spill] sm:$0xff] %v2948_v37  ;;  %3991 = vst [vmem:[#allocation126_spill] sm:$0xff] %v2951_v39 }
 0x14a   : > { %3993 = vst [vmem:[#allocation127_spill] sm:$0xff] %v2957_v33  ;;  %3994 = vst [vmem:[#allocation128_spill] sm:$0xff] %v2960_v42  ;;  %v3007_v46 = vmul.f32 %v2980_v28, %v2980_v28  ;;  %v3013_v42 = vmul.f32 0.0078125, %v2702_v61 }
 0x14b   : > { %3995 = vst [vmem:[#allocation129_spill] sm:$0xff] %v2963_v48  ;;  %3999 = vst [vmem:[#allocation130_spill] sm:$0xff] %v2980_v28  ;;  %v3053_v48 = vmul.f32 0.0078125, %v2809_v24  ;;  %v3065_v24 = vmul.f32 0.0078125, %v2860_v3 }
 0x14c   : > { %4003 = vst [vmem:[#allocation131_spill] sm:$0xff] %v3007_v46  ;;  %4004 = vst [vmem:[#allocation132_spill] sm:$0xff] %v3010_v49 }
 0x14d   : > { %v2912_v45 = vpop.xlane.xlu1 %399  ;;  %v2914_v35 = vpop.xlane.xlu0 %397  ;;  %4005 = vst [vmem:[#allocation133_spill] sm:$0xff] %v3013_v42  ;;  %4009 = vst [vmem:[#allocation60_spill] sm:$0xff] %v3026_v21 }
 0x14e   : > { %4014 = vst [vmem:[#allocation134_spill] sm:$0xff] %v3053_v48  ;;  %4017 = vst [vmem:[#allocation136_spill] sm:$0xff] %v3065_v24 }
 0x151   : > { %v468_v40 = vpop.xlane.xlu1 %467  ;;  %v466_v23 = vpop.xlane.xlu0 %465 }
 0x152   : > { %v658_v43 = vmul.f32 0.0078125, %v468_v40  ;;  %v657_v41 = vmul.f32 0.0078125, %v466_v23  ;;  %v4008_v40 = vld [vmem:[#allocation61_spill] sm:$0xff] }
 0x154   : > { %v786_v44 = vsub.f32 %v658_v43, %v2550_v10  ;;  %v785_v33 = vsub.f32 %v657_v41, %v2528_v8 }
 0x155   : > { %v472_v54 = vpop.xlane.xlu1 %471  ;;  %v470_v23 = vpop.xlane.xlu0 %469 }
 0x156   : > { %v850_v39 = vadd.f32 1e-12, %v786_v44  ;;  %v849_v10 = vadd.f32 1e-12, %v785_v33  ;;  %v660_v43 = vmul.f32 0.0078125, %v472_v54  ;;  %v659_v8 = vmul.f32 0.0078125, %v470_v23 }
 0x157   : > { %v4007_v54 = vld [vmem:[#allocation68_spill] sm:$0xff]  ;;  %v3021_v23 = vmul.f32 %v3001_v12, %v3001_v12 }
 0x158   : > { %1582 = vrcp.f32 %v850_v39  ;;  %v788_v44 = vsub.f32 %v660_v43, %v2537_v47  ;;  %v787_v33 = vsub.f32 %v659_v8, %v4007_v54  ;;  %v3030_v47 = vmul.f32 %v3010_v49, %v3010_v49  ;;  %4011 = vst [vmem:[#allocation68_spill] sm:$0xff] %v3039_v26 }
 0x159   : > { %1584 = vrcp.f32 %v849_v10  ;;  %v476_v61 = vpop.xlane.xlu1 %475  ;;  %v474_v41 = vpop.xlane.xlu0 %473  ;;  %v3036_v54 = vmul.f32 %v3013_v42, %v3013_v42  ;;  %v3050_v8 = vmul.f32 0.0078125, %v2758_v31  ;;  %v3062_v31 = vmul.f32 0.0078125, %v2811_v36 }
 0x15a   : > { %v852_v46 = vadd.f32 1e-12, %v788_v44  ;;  %v851_v37 = vadd.f32 1e-12, %v787_v33  ;;  %v662_v39 = vmul.f32 0.0078125, %v476_v61  ;;  %v661_v28 = vmul.f32 0.0078125, %v474_v41 }
 0x15b   : > { %v3047_v61 = vmul.f32 %v3026_v21, %v3026_v21  ;;  %4013 = vst [vmem:[#allocation61_spill] sm:$0xff] %v3050_v8  ;;  %4016 = vst [vmem:[#allocation135_spill] sm:$0xff] %v3062_v31  ;;  %v3081_v36 = vmul.f32 0.0078125, %v2912_v45 }
 0x15c   : > { %1586 = vrcp.f32 %v852_v46  ;;  %v790_v41 = vsub.f32 %v662_v39, %v2562_v11  ;;  %v789_v33 = vsub.f32 %v661_v28, %v2568_v52  ;;  %v3059_v28 = vmul.f32 %v3039_v26, %v3039_v26 }
 0x15d   : > { %1588 = vrcp.f32 %v851_v37  ;;  %v480_v25 = vpop.xlane.xlu1 %479  ;;  %v478_v49 = vpop.xlane.xlu0 %477  ;;  %v3068_v37 = vmul.f32 0.0078125, %v2862_v2  ;;  %4019 = vst [vmem:[#allocation138_spill] sm:$0xff] %v3081_v36  ;;  %v3088_v52 = vmul.f32 %v3062_v31, %v3062_v31 }
 0x15e   : > { %v854_v43 = vadd.f32 1e-12, %v790_v41  ;;  %v853_v44 = vadd.f32 1e-12, %v789_v33  ;;  %v664_v46 = vmul.f32 0.0078125, %v480_v25  ;;  %v663_v42 = vmul.f32 0.0078125, %v478_v49 }
 0x15f   : > { %4018 = vst [vmem:[#allocation137_spill] sm:$0xff] %v3068_v37  ;;  %v3074_v41 = vmul.f32 %v3050_v8, %v3050_v8  ;;  %v3078_v33 = vmul.f32 %v3053_v48, %v3053_v48  ;;  %v3092_v48 = vmul.f32 %v3065_v24, %v3065_v24  ;;  %v3096_v8 = vmul.f32 %v3068_v37, %v3068_v37 }
 0x160   : > { %1590 = vrcp.f32 %v854_v43  ;;  %v792_v39 = vsub.f32 %v664_v46, %v2577_v13  ;;  %v791_v49 = vsub.f32 %v663_v42, %v2586_v58  ;;  %v3084_v43 = vmul.f32 0.0078125, %v2914_v35  ;;  %v3101_v35 = vld [vmem:[%s3625_s1] ss:$0 sm:$0xff] }
 0x161   : > { %1592 = vrcp.f32 %v853_v44  ;;  %v484_v3 = vpop.xlane.xlu1 %483  ;;  %v482_v42 = vpop.xlane.xlu0 %481  ;;  %4021 = vst [vmem:[#allocation140_spill] sm:$0xff] %v3096_v8 }
 0x162   : > { %v1583_v2 = vpop.eup %1582  ;;  %4020 = vst [vmem:[#allocation139_spill] sm:$0xff] %v3084_v43  ;;  %v856_v13 = vadd.f32 1e-12, %v792_v39  ;;  %v855_v25 = vadd.f32 1e-12, %v791_v49  ;;  %v666_v58 = vmul.f32 0.0078125, %v484_v3  ;;  %v3106_v3 = vmul.f32 %v3081_v36, %v3081_v36 }
 0x163   : > { %v1585_v46 = vpop.eup %1584  ;;  %v978_v45 = vmul.f32 %v1583_v2, %v1583_v2  ;;  %v665_v44 = vmul.f32 0.0078125, %v482_v42  ;;  %v4023_v2 = vld [vmem:[#allocation65_spill] sm:$0xff]  ;;  %v3114_v21 = vmul.f32 %v3084_v43, %v3084_v43 }
 0x164   : > { %v977_v39 = vmul.f32 %v1585_v46, %v1585_v46  ;;  %1594 = vrcp.f32 %v856_v13  ;;  %v794_v49 = vsub.f32 %v666_v58, %v2602_v15  ;;  %4022 = vst [vmem:[#allocation141_spill] sm:$0xff] %v3106_v3  ;;  %v4024_v42 = vsub.f32 %v3894_v62, %v4023_v2  ;;  %v3119_v15 = vld [vmem:[%s3626_s2] ss:$0 sm:$0xff]  ;;  %v4026_v13 = vld [vmem:[#allocation10_spill] sm:$0xff]  ;;  %v4027_v58 = vld [vmem:[#allocation75_spill] sm:$0xff] }
 0x165   : > { %1596 = vrcp.f32 %v855_v25  ;;  %v793_v37 = vsub.f32 %v665_v44, %v2608_v56  ;;  %v488_v31 = vpop.xlane.xlu1 %487  ;;  %4025 = vst [vmem:[#allocation65_spill] sm:$0xff] %v3114_v21  ;;  %v4028_v46 = vsub.f32 %v4026_v13, %v4027_v58  ;;  %v486_v25 = vpop.xlane.xlu0 %485  ;;  %v4029_v13 = vld [vmem:[#allocation11_spill] sm:$0xff] }
 0x166   : > { %v1108_v24 = vmul.f32 %v4024_v42, %v978_v45  ;;  %v1587_v26 = vpop.eup %1586  ;;  %v858_v62 = vadd.f32 1e-12, %v794_v49  ;;  %v668_v45 = vmul.f32 0.0078125, %v488_v31  ;;  %v667_v11 = vmul.f32 0.0078125, %v486_v25 }
 0x167   : > { %v1107_v36 = vmul.f32 %v4028_v46, %v977_v39  ;;  %v1589_v2 = vpop.eup %1588  ;;  %v980_v44 = vmul.f32 %v1587_v26, %v1587_v26  ;;  %v857_v42 = vadd.f32 1e-12, %v793_v37  ;;  %v4030_v39 = vld [vmem:[#allocation76_spill] sm:$0xff]  ;;  %v4032_v46 = vld [vmem:[#allocation9_spill] sm:$0xff] }
 0x168   : > { %v1178_v56 = vmul.f32 %v3101_v35, %v1108_v24  ;;  %v979_v21 = vmul.f32 %v1589_v2, %v1589_v2  ;;  %1598 = vrcp.f32 %v858_v62  ;;  %v796_v10 = vsub.f32 %v668_v45, %v2617_v53 }
 0x169   : > { %v1177_v43 = vmul.f32 %v3101_v35, %v1107_v36  ;;  %v4031_v49 = vsub.f32 %v4029_v13, %v4030_v39  ;;  %1600 = vrcp.f32 %v857_v42  ;;  %v795_v58 = vsub.f32 %v667_v11, %v2626_v9  ;;  %v492_v24 = vpop.xlane.xlu1 %491  ;;  %v4033_v36 = vld [vmem:[#allocation74_spill] sm:$0xff]  ;;  %v490_v53 = vpop.xlane.xlu0 %489  ;;  %v4035_v13 = vld [vmem:[#allocation13_spill] sm:$0xff] }
 0x16a   : > { %v1248_v3 = vadd.f32 %v3119_v15, %v1178_v56  ;;  %v1591_v26 = vpop.eup %1590  ;;  %v4034_v25 = vsub.f32 %v4032_v46, %v4033_v36  ;;  %v860_v62 = vadd.f32 1e-12, %v796_v10  ;;  %v670_v8 = vmul.f32 0.0078125, %v492_v24  ;;  %v4036_v39 = vld [vmem:[#allocation66_spill] sm:$0xff]  ;;  %v4039_v46 = vld [vmem:[#allocation67_spill] sm:$0xff] }
 0x16b   : > { %v1110_v31 = vmul.f32 %v4031_v49, %v980_v44  ;;  %v1247_v37 = vadd.f32 %v3119_v15, %v1177_v43  ;;  %v1593_v45 = vpop.eup %1592  ;;  %v982_v11 = vmul.f32 %v1591_v26, %v1591_v26  ;;  %v859_v56 = vadd.f32 1e-12, %v795_v58 }
 0x16c   : > { %v1109_v2 = vmul.f32 %v4034_v25, %v979_v21  ;;  %1312 = vst [vmem:[%s3138_s30 + $0x8] sm:$0xff] %v1248_v3  ;;  %v669_v44 = vmul.f32 0.0078125, %v490_v53  ;;  %v981_v21 = vmul.f32 %v1593_v45, %v1593_v45  ;;  %1602 = vrcp.f32 %v860_v62 }
 0x16d   : > { %v1180_v9 = vmul.f32 %v3101_v35, %v1110_v31  ;;  %1311 = vst [vmem:[%s3138_s30] sm:$0xff] %v1247_v37  ;;  %v798_v10 = vsub.f32 %v670_v8, %v2638_v6  ;;  %v4037_v49 = vsub.f32 %v4035_v13, %v4036_v39  ;;  %1604 = vrcp.f32 %v859_v56  ;;  %v496_v31 = vpop.xlane.xlu1 %495  ;;  %v4038_v37 = vld [vmem:[#allocation14_spill] sm:$0xff]  ;;  %v494_v8 = vpop.xlane.xlu0 %493 }
 0x16e   : > { %v1179_v43 = vmul.f32 %v3101_v35, %v1109_v2  ;;  %v797_v3 = vsub.f32 %v669_v44, %v2644_v14  ;;  %v1595_v58 = vpop.eup %1594  ;;  %v4040_v36 = vsub.f32 %v4038_v37, %v4039_v46  ;;  %v672_v6 = vmul.f32 0.0078125, %v496_v31  ;;  %v4044_v31 = vld [vmem:[#allocation16_spill] sm:$0xff] }
 0x16f   : > { %v1250_v42 = vadd.f32 %v3119_v15, %v1180_v9  ;;  %v1112_v24 = vmul.f32 %v4037_v49, %v982_v11  ;;  %v862_v2 = vadd.f32 1e-12, %v798_v10  ;;  %v1597_v62 = vpop.eup %1596  ;;  %v984_v45 = vmul.f32 %v1595_v58, %v1595_v58  ;;  %v4042_v10 = vld [vmem:[#allocation69_spill] sm:$0xff]  ;;  %v4045_v58 = vld [vmem:[#allocation70_spill] sm:$0xff] }
 0x170   : > { %v1249_v26 = vadd.f32 %v3119_v15, %v1179_v43  ;;  %v1111_v25 = vmul.f32 %v4040_v36, %v981_v21  ;;  %v861_v9 = vadd.f32 1e-12, %v797_v3  ;;  %v671_v11 = vmul.f32 0.0078125, %v494_v8  ;;  %v4041_v21 = vld [vmem:[#allocation15_spill] sm:$0xff] }
 0x171   : > { %1314 = vst [vmem:[%s3138_s30 + $0x18] sm:$0xff] %v1250_v42  ;;  %v1182_v53 = vmul.f32 %v3101_v35, %v1112_v24  ;;  %v983_v56 = vmul.f32 %v1597_v62, %v1597_v62  ;;  %1606 = vrcp.f32 %v862_v2  ;;  %v800_v44 = vsub.f32 %v672_v6, %v2657_v18  ;;  %v500_v49 = vpop.xlane.xlu1 %499  ;;  %v498_v36 = vpop.xlane.xlu0 %497 }
 0x172   : > { %1313 = vst [vmem:[%s3138_s30 + $0x10] sm:$0xff] %v1249_v26  ;;  %v1181_v14 = vmul.f32 %v3101_v35, %v1111_v25  ;;  %v4043_v13 = vsub.f32 %v4041_v21, %v4042_v10  ;;  %1608 = vrcp.f32 %v861_v9  ;;  %v799_v42 = vsub.f32 %v671_v11, %v2666_v22  ;;  %v1599_v24 = vpop.eup %1598  ;;  %v4047_v11 = vld [vmem:[#allocation17_spill] sm:$0xff] }
 0x173   : > { %v1252_v43 = vadd.f32 %v3119_v15, %v1182_v53  ;;  %v4046_v26 = vsub.f32 %v4044_v31, %v4045_v58  ;;  %v864_v46 = vadd.f32 1e-12, %v800_v44  ;;  %v674_v18 = vmul.f32 0.0078125, %v500_v49  ;;  %v1601_v25 = vpop.eup %1600 }
 0x174   : > { %v1114_v39 = vmul.f32 %v4043_v13, %v984_v45  ;;  %v1251_v3 = vadd.f32 %v3119_v15, %v1181_v14  ;;  %v986_v6 = vmul.f32 %v1599_v24, %v1599_v24  ;;  %v863_v8 = vadd.f32 1e-12, %v799_v42  ;;  %v4048_v14 = vld [vmem:[#allocation12_spill] sm:$0xff]  ;;  %v4051_v42 = vld [vmem:[#allocation79_spill] sm:$0xff] }
 0x175   : > { %v1113_v37 = vmul.f32 %v4046_v26, %v983_v56  ;;  %1316 = vst [vmem:[%s3138_s30 + $0x28] sm:$0xff] %v1252_v43  ;;  %v673_v62 = vmul.f32 0.0078125, %v498_v36  ;;  %v985_v53 = vmul.f32 %v1601_v25, %v1601_v25  ;;  %1610 = vrcp.f32 %v864_v46  ;;  %v504_v21 = vpop.xlane.xlu1 %503  ;;  %v502_v31 = vpop.xlane.xlu0 %501 }
 0x176   : > { %v1184_v2 = vmul.f32 %v3101_v35, %v1114_v39  ;;  %1315 = vst [vmem:[%s3138_s30 + $0x20] sm:$0xff] %v1251_v3  ;;  %v802_v45 = vsub.f32 %v674_v18, %v2678_v57  ;;  %v4049_v56 = vsub.f32 %v4047_v11, %v4048_v14  ;;  %1612 = vrcp.f32 %v863_v8  ;;  %v1603_v10 = vpop.eup %1602  ;;  %v4050_v39 = vld [vmem:[#allocation18_spill] sm:$0xff]  ;;  %v4054_v8 = vld [vmem:[#allocation80_spill] sm:$0xff] }
 0x177   : > { %v1183_v22 = vmul.f32 %v3101_v35, %v1113_v37  ;;  %v801_v43 = vsub.f32 %v673_v62, %v2684_v16  ;;  %v4052_v49 = vsub.f32 %v4050_v39, %v4051_v42  ;;  %v676_v57 = vmul.f32 0.0078125, %v504_v21  ;;  %v1605_v58 = vpop.eup %1604  ;;  %v4056_v14 = vld [vmem:[#allocation20_spill] sm:$0xff] }
 0x178   : > { %v1254_v9 = vadd.f32 %v3119_v15, %v1184_v2  ;;  %v1116_v44 = vmul.f32 %v4049_v56, %v986_v6  ;;  %v866_v3 = vadd.f32 1e-12, %v802_v45  ;;  %v988_v37 = vmul.f32 %v1603_v10, %v1603_v10  ;;  %v4053_v6 = vld [vmem:[#allocation19_spill] sm:$0xff]  ;;  %v4057_v56 = vld [vmem:[#allocation81_spill] sm:$0xff] }
 0x179   : > { %v1253_v13 = vadd.f32 %v3119_v15, %v1183_v22  ;;  %v1115_v24 = vmul.f32 %v4052_v49, %v985_v53  ;;  %v865_v46 = vadd.f32 1e-12, %v801_v43  ;;  %v675_v18 = vmul.f32 0.0078125, %v502_v31  ;;  %v508_v45 = vpop.xlane.xlu1 %507  ;;  %v506_v10 = vpop.xlane.xlu0 %505 }
 0x17a   : > { %1318 = vst [vmem:[%s3138_s30 + $0x38] sm:$0xff] %v1254_v9  ;;  %v1186_v26 = vmul.f32 %v3101_v35, %v1116_v44  ;;  %v987_v36 = vmul.f32 %v1605_v58, %v1605_v58  ;;  %1614 = vrcp.f32 %v866_v3  ;;  %v804_v25 = vsub.f32 %v676_v57, %v2694_v60  ;;  %v4059_v58 = vld [vmem:[#allocation21_spill] sm:$0xff] }
 0x17b   : > { %1317 = vst [vmem:[%s3138_s30 + $0x30] sm:$0xff] %v1253_v13  ;;  %v1185_v16 = vmul.f32 %v3101_v35, %v1115_v24  ;;  %v4055_v62 = vsub.f32 %v4053_v6, %v4054_v8  ;;  %1616 = vrcp.f32 %v865_v46  ;;  %v803_v53 = vsub.f32 %v675_v18, %v2708_v51  ;;  %v1607_v9 = vpop.eup %1606  ;;  %v4063_v6 = vld [vmem:[#allocation83_spill] sm:$0xff] }
 0x17c   : > { %v1256_v2 = vadd.f32 %v3119_v15, %v1186_v26  ;;  %v4058_v44 = vsub.f32 %v4056_v14, %v4057_v56  ;;  %v868_v21 = vadd.f32 1e-12, %v804_v25  ;;  %v678_v60 = vmul.f32 0.0078125, %v508_v45  ;;  %v1609_v13 = vpop.eup %1608  ;;  %v4060_v26 = vld [vmem:[#allocation82_spill] sm:$0xff] }
 0x17d   : > { %v1118_v22 = vmul.f32 %v4055_v62, %v988_v37  ;;  %v1255_v11 = vadd.f32 %v3119_v15, %v1185_v16  ;;  %v990_v42 = vmul.f32 %v1607_v9, %v1607_v9  ;;  %v867_v49 = vadd.f32 1e-12, %v803_v53  ;;  %v512_v16 = vpop.xlane.xlu1 %511  ;;  %v510_v53 = vpop.xlane.xlu0 %509 }
 0x17e   : > { %v1117_v43 = vmul.f32 %v4058_v44, %v987_v36  ;;  %1320 = vst [vmem:[%s3138_s30 + $0x48] sm:$0xff] %v1256_v2  ;;  %v677_v24 = vmul.f32 0.0078125, %v506_v10  ;;  %v989_v3 = vmul.f32 %v1609_v13, %v1609_v13  ;;  %1618 = vrcp.f32 %v868_v21  ;;  %v4062_v2 = vld [vmem:[#allocation22_spill] sm:$0xff]  ;;  %v4066_v10 = vld [vmem:[#allocation84_spill] sm:$0xff] }
 0x17f   : > { %v1188_v39 = vmul.f32 %v3101_v35, %v1118_v22  ;;  %1319 = vst [vmem:[%s3138_s30 + $0x40] sm:$0xff] %v1255_v11  ;;  %v806_v57 = vsub.f32 %v678_v60, %v2720_v27  ;;  %v4061_v37 = vsub.f32 %v4059_v58, %v4060_v26  ;;  %1620 = vrcp.f32 %v867_v49  ;;  %v1611_v36 = vpop.eup %1610  ;;  %v4065_v60 = vld [vmem:[#allocation23_spill] sm:$0xff] }
 0x180   : > { %v1187_v51 = vmul.f32 %v3101_v35, %v1117_v43  ;;  %v805_v18 = vsub.f32 %v677_v24, %v2726_v4  ;;  %v4064_v8 = vsub.f32 %v4062_v2, %v4063_v6  ;;  %v680_v27 = vmul.f32 0.0078125, %v512_v16  ;;  %v1613_v45 = vpop.eup %1612 }
 0x181   : > { %v1258_v31 = vadd.f32 %v3119_v15, %v1188_v39  ;;  %v1120_v46 = vmul.f32 %v4061_v37, %v990_v42  ;;  %v870_v22 = vadd.f32 1e-12, %v806_v57  ;;  %v992_v11 = vmul.f32 %v1611_v36, %v1611_v36  ;;  %v516_v49 = vpop.xlane.xlu1 %515  ;;  %v4069_v57 = vld [vmem:[#allocation85_spill] sm:$0xff]  ;;  %v514_v37 = vpop.xlane.xlu0 %513 }
 0x182   : > { %v1257_v25 = vadd.f32 %v3119_v15, %v1187_v51  ;;  %v1119_v62 = vmul.f32 %v4064_v8, %v989_v3  ;;  %v869_v14 = vadd.f32 1e-12, %v805_v18  ;;  %v679_v56 = vmul.f32 0.0078125, %v510_v53  ;;  %v4068_v3 = vld [vmem:[#allocation24_spill] sm:$0xff] }
 0x183   : > { %1322 = vst [vmem:[%s3138_s30 + $0x58] sm:$0xff] %v1258_v31  ;;  %v1190_v9 = vmul.f32 %v3101_v35, %v1120_v46  ;;  %v991_v44 = vmul.f32 %v1613_v45, %v1613_v45  ;;  %1622 = vrcp.f32 %v870_v22  ;;  %v808_v43 = vsub.f32 %v680_v27, %v2735_v29  ;;  %v4072_v22 = vld [vmem:[#allocation86_spill] sm:$0xff] }
 0x184   : > { %1321 = vst [vmem:[%s3138_s30 + $0x50] sm:$0xff] %v1257_v25  ;;  %v1189_v4 = vmul.f32 %v3101_v35, %v1119_v62  ;;  %v4067_v13 = vsub.f32 %v4065_v60, %v4066_v10  ;;  %1624 = vrcp.f32 %v869_v14  ;;  %v807_v42 = vsub.f32 %v679_v56, %v2745_v50  ;;  %v1615_v24 = vpop.eup %1614  ;;  %v4071_v62 = vld [vmem:[#allocation25_spill] sm:$0xff]  ;;  %v4074_v56 = vld [vmem:[#allocation26_spill] sm:$0xff] }
 0x185   : > { %v1260_v21 = vadd.f32 %v3119_v15, %v1190_v9  ;;  %v4070_v31 = vsub.f32 %v4068_v3, %v4069_v57  ;;  %v872_v26 = vadd.f32 1e-12, %v808_v43  ;;  %v682_v29 = vmul.f32 0.0078125, %v516_v49  ;;  %v1617_v46 = vpop.eup %1616  ;;  %v520_v9 = vpop.xlane.xlu1 %519  ;;  %v4077_v57 = vld [vmem:[#allocation27_spill] sm:$0xff] }
 0x186   : > { %v1122_v39 = vmul.f32 %v4067_v13, %v992_v11  ;;  %v1259_v51 = vadd.f32 %v3119_v15, %v1189_v4  ;;  %v994_v16 = vmul.f32 %v1615_v24, %v1615_v24  ;;  %v871_v36 = vadd.f32 1e-12, %v807_v42  ;;  %v4075_v4 = vld [vmem:[#allocation87_spill] sm:$0xff]  ;;  %v518_v60 = vpop.xlane.xlu0 %517 }
 0x187   : > { %v1121_v58 = vmul.f32 %v4070_v31, %v991_v44  ;;  %1324 = vst [vmem:[%s3138_s30 + $0x68] sm:$0xff] %v1260_v21  ;;  %v681_v25 = vmul.f32 0.0078125, %v514_v37  ;;  %v993_v2 = vmul.f32 %v1617_v46, %v1617_v46  ;;  %1626 = vrcp.f32 %v872_v26  ;;  %v4078_v31 = vld [vmem:[#allocation88_spill] sm:$0xff] }
 0x188   : > { %v1192_v18 = vmul.f32 %v3101_v35, %v1122_v39  ;;  %1323 = vst [vmem:[%s3138_s30 + $0x60] sm:$0xff] %v1259_v51  ;;  %v810_v6 = vsub.f32 %v682_v29, %v2762_v7  ;;  %v4073_v27 = vsub.f32 %v4071_v62, %v4072_v22  ;;  %1628 = vrcp.f32 %v871_v36  ;;  %v1619_v11 = vpop.eup %1618  ;;  %v4081_v36 = vld [vmem:[#allocation89_spill] sm:$0xff] }
 0x189   : > { %v1191_v50 = vmul.f32 %v3101_v35, %v1121_v58  ;;  %v809_v45 = vsub.f32 %v681_v25, %v2768_v32  ;;  %v4076_v44 = vsub.f32 %v4074_v56, %v4075_v4  ;;  %v684_v7 = vmul.f32 0.0078125, %v520_v9  ;;  %v1621_v10 = vpop.eup %1620  ;;  %v524_v37 = vpop.xlane.xlu1 %523  ;;  %v4083_v9 = vld [vmem:[#allocation104_spill] sm:$0xff]  ;;  %v4084_v56 = vld [vmem:[#allocation29_spill] sm:$0xff]  ;;  %v4085_v4 = vld [vmem:[#allocation90_spill] sm:$0xff] }
 0x18a   : > { %v1262_v8 = vadd.f32 %v3119_v15, %v1192_v18  ;;  %v1124_v53 = vmul.f32 %v4073_v27, %v994_v16  ;;  %v874_v21 = vadd.f32 1e-12, %v810_v6  ;;  %v996_v39 = vmul.f32 %v1619_v11, %v1619_v11  ;;  %v4080_v16 = vld [vmem:[#allocation28_spill] sm:$0xff]  ;;  %v522_v6 = vpop.xlane.xlu0 %521 }
 0x18b   : > { %v1261_v14 = vadd.f32 %v3119_v15, %v1191_v50  ;;  %v1123_v43 = vmul.f32 %v4076_v44, %v993_v2  ;;  %v873_v42 = vadd.f32 1e-12, %v809_v45  ;;  %v683_v49 = vmul.f32 0.0078125, %v518_v60 }
 0x18c   : > { %1326 = vst [vmem:[%s3138_s30 + $0x78] sm:$0xff] %v1262_v8  ;;  %v1194_v13 = vmul.f32 %v3101_v35, %v1124_v53  ;;  %v995_v24 = vmul.f32 %v1621_v10, %v1621_v10  ;;  %1630 = vrcp.f32 %v874_v21  ;;  %v812_v51 = vsub.f32 %v684_v7, %v2777_v59  ;;  %v4087_v21 = vld [vmem:[#allocation105_spill] sm:$0xff] }
 0x18d   : > { %1325 = vst [vmem:[%s3138_s30 + $0x70] sm:$0xff] %v1261_v14  ;;  %v1193_v32 = vmul.f32 %v3101_v35, %v1123_v43  ;;  %v4079_v58 = vsub.f32 %v4077_v57, %v4078_v31  ;;  %1632 = vrcp.f32 %v873_v42  ;;  %v811_v29 = vsub.f32 %v683_v49, %v2786_v19  ;;  %v1623_v46 = vpop.eup %1622  ;;  %v528_v60 = vpop.xlane.xlu1 %527  ;;  %v4089_v42 = vld [vmem:[#allocation91_spill] sm:$0xff] }
 0x18e   : > { %v1264_v3 = vadd.f32 %v3119_v15, %v1194_v13  ;;  %v4082_v25 = vsub.f32 %v4080_v16, %v4081_v36  ;;  %v876_v2 = vadd.f32 1e-12, %v812_v51  ;;  %v686_v59 = vmul.f32 0.0078125, %v524_v37  ;;  %v1625_v8 = vpop.eup %1624  ;;  %v4091_v36 = vld [vmem:[#allocation31_spill] sm:$0xff] }
 0x18f   : > { %v1126_v26 = vmul.f32 %v4079_v58, %v996_v39  ;;  %v1263_v18 = vadd.f32 %v3119_v15, %v1193_v32  ;;  %v998_v22 = vmul.f32 %v1623_v46, %v1623_v46  ;;  %v875_v27 = vadd.f32 1e-12, %v811_v29  ;;  %v4088_v39 = vld [vmem:[#allocation30_spill] sm:$0xff] }
 0x190   : > { %v1125_v50 = vmul.f32 %v4082_v25, %v995_v24  ;;  %1328 = vst [vmem:[%s3138_s30 + $0x88] sm:$0xff] %v1264_v3  ;;  %v685_v53 = vmul.f32 0.0078125, %v522_v6  ;;  %v997_v45 = vmul.f32 %v1625_v8, %v1625_v8  ;;  %1634 = vrcp.f32 %v876_v2  ;;  %v526_v3 = vpop.xlane.xlu0 %525  ;;  %v4092_v25 = vld [vmem:[#allocation92_spill] sm:$0xff] }
 0x191   : > { %v1196_v62 = vmul.f32 %v3101_v35, %v1126_v26  ;;  %1327 = vst [vmem:[%s3138_s30 + $0x80] sm:$0xff] %v1263_v18  ;;  %v814_v11 = vsub.f32 %v686_v59, %v4083_v9  ;;  %v4086_v44 = vsub.f32 %v4084_v56, %v4085_v4  ;;  %1636 = vrcp.f32 %v875_v27  ;;  %v1627_v10 = vpop.eup %1626  ;;  %v532_v6 = vpop.xlane.xlu1 %531  ;;  %v4095_v27 = vld [vmem:[#allocation93_spill] sm:$0xff] }
 0x192   : > { %v1195_v19 = vmul.f32 %v3101_v35, %v1125_v50  ;;  %v813_v7 = vsub.f32 %v685_v53, %v4087_v21  ;;  %v4090_v49 = vsub.f32 %v4088_v39, %v4089_v42  ;;  %v688_v51 = vmul.f32 0.0078125, %v528_v60  ;;  %v1629_v57 = vpop.eup %1628  ;;  %v4097_v21 = vld [vmem:[#allocation110_spill] sm:$0xff] }
 0x193   : > { %v1266_v14 = vadd.f32 %v3119_v15, %v1196_v62  ;;  %v1128_v43 = vmul.f32 %v4086_v44, %v998_v22  ;;  %v878_v24 = vadd.f32 1e-12, %v814_v11  ;;  %v1000_v58 = vmul.f32 %v1627_v10, %v1627_v10  ;;  %v4094_v22 = vld [vmem:[#allocation32_spill] sm:$0xff]  ;;  %v4098_v10 = vld [vmem:[#allocation33_spill] sm:$0xff] }
 0x194   : > { %v1265_v13 = vadd.f32 %v3119_v15, %v1195_v19  ;;  %v1127_v32 = vmul.f32 %v4090_v49, %v997_v45  ;;  %v877_v26 = vadd.f32 1e-12, %v813_v7  ;;  %v687_v29 = vmul.f32 0.0078125, %v526_v3  ;;  %v530_v9 = vpop.xlane.xlu0 %529  ;;  %v4101_v49 = vld [vmem:[#allocation111_spill] sm:$0xff] }
 0x195   : > { %1330 = vst [vmem:[%s3138_s30 + $0x98] sm:$0xff] %v1266_v14  ;;  %v1198_v31 = vmul.f32 %v3101_v35, %v1128_v43  ;;  %v999_v46 = vmul.f32 %v1629_v57, %v1629_v57  ;;  %1638 = vrcp.f32 %v878_v24  ;;  %v816_v18 = vsub.f32 %v688_v51, %v2817_v34  ;;  %v536_v24 = vpop.xlane.xlu1 %535  ;;  %v4102_v57 = vld [vmem:[#allocation34_spill] sm:$0xff] }
 0x196   : > { %1329 = vst [vmem:[%s3138_s30 + $0x90] sm:$0xff] %v1265_v13  ;;  %v1197_v37 = vmul.f32 %v3101_v35, %v1127_v32  ;;  %v4093_v50 = vsub.f32 %v4091_v36, %v4092_v25  ;;  %1640 = vrcp.f32 %v877_v26  ;;  %v815_v59 = vsub.f32 %v687_v29, %v2826_v38  ;;  %v1631_v8 = vpop.eup %1630  ;;  %v4099_v13 = vld [vmem:[#allocation94_spill] sm:$0xff] }
 0x197   : > { %v1268_v16 = vadd.f32 %v3119_v15, %v1198_v31  ;;  %v4096_v53 = vsub.f32 %v4094_v22, %v4095_v27  ;;  %v880_v45 = vadd.f32 1e-12, %v816_v18  ;;  %v690_v34 = vmul.f32 0.0078125, %v532_v6  ;;  %v1633_v11 = vpop.eup %1632  ;;  %v4103_v31 = vld [vmem:[#allocation95_spill] sm:$0xff]  ;;  %v4105_v6 = vld [vmem:[#allocation113_spill] sm:$0xff]  ;;  %v4107_v27 = vld [vmem:[#allocation96_spill] sm:$0xff] }
 0x198   : > { %v1130_v2 = vmul.f32 %v4093_v50, %v1000_v58  ;;  %v1267_v62 = vadd.f32 %v3119_v15, %v1197_v37  ;;  %v1002_v56 = vmul.f32 %v1631_v8, %v1631_v8  ;;  %v879_v4 = vadd.f32 1e-12, %v815_v59  ;;  %v4106_v22 = vld [vmem:[#allocation35_spill] sm:$0xff] }
 0x199   : > { %v1129_v19 = vmul.f32 %v4096_v53, %v999_v46  ;;  %1332 = vst [vmem:[%s3138_s30 + $0xa8] sm:$0xff] %v1268_v16  ;;  %v689_v44 = vmul.f32 0.0078125, %v530_v9  ;;  %v1001_v43 = vmul.f32 %v1633_v11, %v1633_v11  ;;  %1642 = vrcp.f32 %v880_v45  ;;  %v534_v46 = vpop.xlane.xlu0 %533  ;;  %v4109_v45 = vld [vmem:[#allocation115_spill] sm:$0xff]  ;;  %v540_v9 = vpop.xlane.xlu1 %539 }
 0x19a   : > { %v1200_v14 = vmul.f32 %v3101_v35, %v1130_v2  ;;  %1331 = vst [vmem:[%s3138_s30 + $0xa0] sm:$0xff] %v1267_v62  ;;  %v818_v7 = vsub.f32 %v690_v34, %v4097_v21  ;;  %v4100_v39 = vsub.f32 %v4098_v10, %v4099_v13  ;;  %1644 = vrcp.f32 %v879_v4  ;;  %v1635_v51 = vpop.eup %1634  ;;  %v4111_v4 = vld [vmem:[#allocation97_spill] sm:$0xff] }
 0x19b   : > { %v1199_v38 = vmul.f32 %v3101_v35, %v1129_v19  ;;  %v817_v32 = vsub.f32 %v689_v44, %v4101_v49  ;;  %v4104_v58 = vsub.f32 %v4102_v57, %v4103_v31  ;;  %v692_v37 = vmul.f32 0.0078125, %v536_v24  ;;  %v1637_v18 = vpop.eup %1636  ;;  %v4113_v24 = vld [vmem:[#allocation118_spill] sm:$0xff]  ;;  %v4114_v57 = vld [vmem:[#allocation37_spill] sm:$0xff] }
 0x19c   : > { %v1270_v60 = vadd.f32 %v3119_v15, %v1200_v14  ;;  %v1132_v42 = vmul.f32 %v4100_v39, %v1002_v56  ;;  %v882_v29 = vadd.f32 1e-12, %v818_v7  ;;  %v1004_v36 = vmul.f32 %v1635_v51, %v1635_v51  ;;  %v4110_v56 = vld [vmem:[#allocation36_spill] sm:$0xff]  ;;  %v4115_v31 = vld [vmem:[#allocation98_spill] sm:$0xff] }
 0x19d   : > { %v1269_v3 = vadd.f32 %v3119_v15, %v1199_v38  ;;  %v1131_v26 = vmul.f32 %v4104_v58, %v1001_v43  ;;  %v881_v25 = vadd.f32 1e-12, %v817_v32  ;;  %v691_v50 = vmul.f32 0.0078125, %v534_v46  ;;  %v538_v7 = vpop.xlane.xlu0 %537  ;;  %v544_v46 = vpop.xlane.xlu1 %543 }
 0x19e   : > { %1334 = vst [vmem:[%s3138_s30 + $0xb8] sm:$0xff] %v1270_v60  ;;  %v1202_v16 = vmul.f32 %v3101_v35, %v1132_v42  ;;  %v1003_v59 = vmul.f32 %v1637_v18, %v1637_v18  ;;  %1646 = vrcp.f32 %v882_v29  ;;  %v820_v8 = vsub.f32 %v692_v37, %v4105_v6  ;;  %v4117_v29 = vld [vmem:[#allocation119_spill] sm:$0xff] }
 0x19f   : > { %1333 = vst [vmem:[%s3138_s30 + $0xb0] sm:$0xff] %v1269_v3  ;;  %v1201_v2 = vmul.f32 %v3101_v35, %v1131_v26  ;;  %v4108_v53 = vsub.f32 %v4106_v22, %v4107_v27  ;;  %1648 = vrcp.f32 %v881_v25  ;;  %v819_v34 = vsub.f32 %v691_v50, %v4109_v45  ;;  %v1639_v11 = vpop.eup %1638  ;;  %v4119_v25 = vld [vmem:[#allocation99_spill] sm:$0xff] }
 0x1a0   : > { %v1272_v62 = vadd.f32 %v3119_v15, %v1202_v16  ;;  %v4112_v44 = vsub.f32 %v4110_v56, %v4111_v4  ;;  %v884_v43 = vadd.f32 1e-12, %v820_v8  ;;  %v694_v21 = vmul.f32 0.0078125, %v540_v9  ;;  %v1641_v60 = vpop.eup %1640  ;;  %v4121_v9 = vld [vmem:[#allocation121_spill] sm:$0xff]  ;;  %v4122_v56 = vld [vmem:[#allocation39_spill] sm:$0xff]  ;;  %v4123_v4 = vld [vmem:[#allocation100_spill] sm:$0xff] }
 0x1a1   : > { %v1134_v19 = vmul.f32 %v4108_v53, %v1004_v36  ;;  %v1271_v14 = vadd.f32 %v3119_v15, %v1201_v2  ;;  %v1006_v13 = vmul.f32 %v1639_v11, %v1639_v11  ;;  %v883_v39 = vadd.f32 1e-12, %v819_v34  ;;  %v4118_v36 = vld [vmem:[#allocation38_spill] sm:$0xff]  ;;  %v542_v8 = vpop.xlane.xlu0 %541 }
 0x1a2   : > { %v1133_v38 = vmul.f32 %v4112_v44, %v1003_v59  ;;  %1336 = vst [vmem:[%s3138_s30 + $0xc8] sm:$0xff] %v1272_v62  ;;  %v693_v42 = vmul.f32 0.0078125, %v538_v7  ;;  %v1005_v32 = vmul.f32 %v1641_v60, %v1641_v60  ;;  %1650 = vrcp.f32 %v884_v43  ;;  %v4125_v43 = vld [vmem:[#allocation122_spill] sm:$0xff]  ;;  %v548_v7 = vpop.xlane.xlu1 %547 }
 0x1a3   : > { %v1204_v10 = vmul.f32 %v3101_v35, %v1134_v19  ;;  %1335 = vst [vmem:[%s3138_s30 + $0xc0] sm:$0xff] %v1271_v14  ;;  %v822_v51 = vsub.f32 %v694_v21, %v4113_v24  ;;  %v4116_v58 = vsub.f32 %v4114_v57, %v4115_v31  ;;  %1652 = vrcp.f32 %v883_v39  ;;  %v1643_v18 = vpop.eup %1642  ;;  %v4127_v39 = vld [vmem:[#allocation101_spill] sm:$0xff] }
 0x1a4   : > { %v1203_v49 = vmul.f32 %v3101_v35, %v1133_v38  ;;  %v821_v37 = vsub.f32 %v693_v42, %v4117_v29  ;;  %v4120_v50 = vsub.f32 %v4118_v36, %v4119_v25  ;;  %v696_v6 = vmul.f32 0.0078125, %v544_v46  ;;  %v1645_v62 = vpop.eup %1644  ;;  %v4129_v46 = vld [vmem:[#allocation123_spill] sm:$0xff]  ;;  %v4130_v36 = vld [vmem:[#allocation41_spill] sm:$0xff]  ;;  %v4131_v25 = vld [vmem:[#allocation102_spill] sm:$0xff] }
 0x1a5   : > { %v1274_v3 = vadd.f32 %v3119_v15, %v1204_v10  ;;  %v1136_v26 = vmul.f32 %v4116_v58, %v1006_v13  ;;  %v886_v59 = vadd.f32 1e-12, %v822_v51  ;;  %v1008_v27 = vmul.f32 %v1643_v18, %v1643_v18  ;;  %v4126_v13 = vld [vmem:[#allocation40_spill] sm:$0xff]  ;;  %v546_v51 = vpop.xlane.xlu0 %545 }
 0x1a6   : > { %v1273_v16 = vadd.f32 %v3119_v15, %v1203_v49  ;;  %v1135_v2 = vmul.f32 %v4120_v50, %v1005_v32  ;;  %v885_v53 = vadd.f32 1e-12, %v821_v37  ;;  %v695_v19 = vmul.f32 0.0078125, %v542_v8 }
 0x1a7   : > { %1338 = vst [vmem:[%s3138_s30 + $0xd8] sm:$0xff] %v1274_v3  ;;  %v1206_v22 = vmul.f32 %v3101_v35, %v1136_v26  ;;  %v1007_v34 = vmul.f32 %v1645_v62, %v1645_v62  ;;  %1654 = vrcp.f32 %v886_v59  ;;  %v824_v11 = vsub.f32 %v696_v6, %v4121_v9  ;;  %v552_v6 = vpop.xlane.xlu1 %551 }
 0x1a8   : > { %1337 = vst [vmem:[%s3138_s30 + $0xd0] sm:$0xff] %v1273_v16  ;;  %v1205_v45 = vmul.f32 %v3101_v35, %v1135_v2  ;;  %v4124_v44 = vsub.f32 %v4122_v56, %v4123_v4  ;;  %1656 = vrcp.f32 %v885_v53  ;;  %v823_v21 = vsub.f32 %v695_v19, %v4125_v43  ;;  %v1647_v60 = vpop.eup %1646 }
 0x1a9   : > { %v1276_v14 = vadd.f32 %v3119_v15, %v1206_v22  ;;  %v4128_v42 = vsub.f32 %v4126_v13, %v4127_v39  ;;  %v888_v32 = vadd.f32 1e-12, %v824_v11  ;;  %v698_v24 = vmul.f32 0.0078125, %v548_v7  ;;  %v1649_v3 = vpop.eup %1648  ;;  %v4133_v22 = vld [vmem:[#allocation42_spill] sm:$0xff]  ;;  %v550_v9 = vpop.xlane.xlu0 %549  ;;  %v4136_v7 = vld [vmem:[#allocation43_spill] sm:$0xff]  ;;  %v4139_v39 = vld [vmem:[#allocation124_spill] sm:$0xff] }
 0x1aa   : > { %v1138_v38 = vmul.f32 %v4124_v44, %v1008_v27  ;;  %v1275_v10 = vadd.f32 %v3119_v15, %v1205_v45  ;;  %v1010_v31 = vmul.f32 %v1647_v60, %v1647_v60  ;;  %v887_v58 = vadd.f32 1e-12, %v823_v21  ;;  %v4134_v27 = vld [vmem:[#allocation103_spill] sm:$0xff]  ;;  %v4137_v60 = vld [vmem:[#allocation106_spill] sm:$0xff] }
 0x1ab   : > { %v1137_v49 = vmul.f32 %v4128_v42, %v1007_v34  ;;  %1340 = vst [vmem:[%s3138_s30 + $0xe8] sm:$0xff] %v1276_v14  ;;  %v697_v26 = vmul.f32 0.0078125, %v546_v51  ;;  %v1009_v37 = vmul.f32 %v1649_v3, %v1649_v3  ;;  %1658 = vrcp.f32 %v888_v32  ;;  %v4140_v51 = vld [vmem:[#allocation44_spill] sm:$0xff]  ;;  %v4141_v3 = vld [vmem:[#allocation107_spill] sm:$0xff] }
 0x1ac   : > { %v1208_v57 = vmul.f32 %v3101_v35, %v1138_v38  ;;  %1339 = vst [vmem:[%s3138_s30 + $0xe0] sm:$0xff] %v1275_v10  ;;  %v826_v18 = vsub.f32 %v698_v24, %v4129_v46  ;;  %v4132_v50 = vsub.f32 %v4130_v36, %v4131_v25  ;;  %1660 = vrcp.f32 %v887_v58  ;;  %v1651_v8 = vpop.eup %1650 }
 0x1ad   : > { %v1207_v29 = vmul.f32 %v3101_v35, %v1137_v49  ;;  %v825_v59 = vsub.f32 %v697_v26, %v2924_v30  ;;  %v4135_v53 = vsub.f32 %v4133_v22, %v4134_v27  ;;  %v700_v34 = vmul.f32 0.0078125, %v552_v6  ;;  %v1653_v11 = vpop.eup %1652  ;;  %v556_v49 = vpop.xlane.xlu1 %555  ;;  %v4144_v6 = vld [vmem:[#allocation45_spill] sm:$0xff]  ;;  %v4147_v27 = vld [vmem:[#allocation127_spill] sm:$0xff] }
 0x1ae   : > { %v1278_v16 = vadd.f32 %v3119_v15, %v1208_v57  ;;  %v1140_v2 = vmul.f32 %v4132_v50, %v1010_v31  ;;  %v890_v45 = vadd.f32 1e-12, %v826_v18  ;;  %v1012_v56 = vmul.f32 %v1651_v8, %v1651_v8  ;;  %v554_v26 = vpop.xlane.xlu0 %553  ;;  %v4143_v50 = vld [vmem:[#allocation125_spill] sm:$0xff]  ;;  %v4145_v8 = vld [vmem:[#allocation108_spill] sm:$0xff] }
 0x1af   : > { %v1277_v62 = vadd.f32 %v3119_v15, %v1207_v29  ;;  %v1139_v19 = vmul.f32 %v4135_v53, %v1009_v37  ;;  %v889_v4 = vadd.f32 1e-12, %v825_v59  ;;  %v699_v44 = vmul.f32 0.0078125, %v550_v9  ;;  %v4148_v9 = vld [vmem:[#allocation46_spill] sm:$0xff] }
 0x1b0   : > { %1342 = vst [vmem:[%s3138_s30 + $0xf8] sm:$0xff] %v1278_v16  ;;  %v1210_v14 = vmul.f32 %v3101_v35, %v1140_v2  ;;  %v1011_v38 = vmul.f32 %v1653_v11, %v1653_v11  ;;  %1662 = vrcp.f32 %v890_v45  ;;  %v828_v43 = vsub.f32 %v700_v34, %v2933_v55  ;;  %v4149_v11 = vld [vmem:[#allocation109_spill] sm:$0xff] }
 0x1b1   : > { %1341 = vst [vmem:[%s3138_s30 + $0xf0] sm:$0xff] %v1277_v62  ;;  %v1209_v30 = vmul.f32 %v3101_v35, %v1139_v19  ;;  %v4138_v10 = vsub.f32 %v4136_v7, %v4137_v60  ;;  %1664 = vrcp.f32 %v889_v4  ;;  %v827_v42 = vsub.f32 %v699_v44, %v4139_v39  ;;  %v1655_v32 = vpop.eup %1654  ;;  %v560_v19 = vpop.xlane.xlu1 %559 }
 0x1b2   : > { %v1280_v21 = vadd.f32 %v3119_v15, %v1210_v14  ;;  %v4142_v57 = vsub.f32 %v4140_v51, %v4141_v3  ;;  %v892_v58 = vadd.f32 1e-12, %v828_v43  ;;  %v702_v55 = vmul.f32 0.0078125, %v556_v49  ;;  %v1657_v29 = vpop.eup %1656  ;;  %v4151_v49 = vld [vmem:[#allocation47_spill] sm:$0xff] }
 0x1b3   : > { %v1142_v13 = vmul.f32 %v4138_v10, %v1012_v56  ;;  %v1279_v24 = vadd.f32 %v3119_v15, %v1209_v30  ;;  %v1014_v46 = vmul.f32 %v1655_v32, %v1655_v32  ;;  %v891_v18 = vadd.f32 1e-12, %v827_v42  ;;  %v558_v30 = vpop.xlane.xlu0 %557  ;;  %v4152_v32 = vld [vmem:[#allocation112_spill] sm:$0xff] }
 0x1b4   : > { %v1141_v31 = vmul.f32 %v4142_v57, %v1011_v38  ;;  %1344 = vst [vmem:[%s3138_s30 + $0x108] sm:$0xff] %v1280_v21  ;;  %v701_v16 = vmul.f32 0.0078125, %v554_v26  ;;  %v1013_v25 = vmul.f32 %v1657_v29, %v1657_v29  ;;  %1666 = vrcp.f32 %v892_v58  ;;  %v4155_v26 = vld [vmem:[#allocation114_spill] sm:$0xff] }
 0x1b5   : > { %v1212_v37 = vmul.f32 %v3101_v35, %v1142_v13  ;;  %1343 = vst [vmem:[%s3138_s30 + $0x100] sm:$0xff] %v1279_v24  ;;  %v830_v2 = vsub.f32 %v702_v55, %v4143_v50  ;;  %v4146_v62 = vsub.f32 %v4144_v6, %v4145_v8  ;;  %1668 = vrcp.f32 %v891_v18  ;;  %v1659_v45 = vpop.eup %1658  ;;  %v564_v57 = vpop.xlane.xlu1 %563  ;;  %v4154_v55 = vld [vmem:[#allocation48_spill] sm:$0xff] }
 0x1b6   : > { %v1211_v36 = vmul.f32 %v3101_v35, %v1141_v31  ;;  %v829_v53 = vsub.f32 %v701_v16, %v4147_v27  ;;  %v4150_v14 = vsub.f32 %v4148_v9, %v4149_v11  ;;  %v704_v44 = vmul.f32 0.0078125, %v560_v19  ;;  %v1661_v38 = vpop.eup %1660  ;;  %v4160_v11 = vld [vmem:[#allocation50_spill] sm:$0xff] }
 0x1b7   : > { %v1282_v59 = vadd.f32 %v3119_v15, %v1212_v37  ;;  %v1144_v22 = vmul.f32 %v4146_v62, %v1014_v46  ;;  %v894_v4 = vadd.f32 1e-12, %v830_v2  ;;  %v1016_v21 = vmul.f32 %v1659_v45, %v1659_v45  ;;  %v562_v18 = vpop.xlane.xlu0 %561  ;;  %v4157_v62 = vld [vmem:[#allocation49_spill] sm:$0xff] }
 0x1b8   : > { %v1281_v34 = vadd.f32 %v3119_v15, %v1211_v36  ;;  %v1143_v56 = vmul.f32 %v4150_v14, %v1013_v25  ;;  %v893_v7 = vadd.f32 1e-12, %v829_v53  ;;  %v703_v60 = vmul.f32 0.0078125, %v558_v30  ;;  %v4161_v14 = vld [vmem:[#allocation117_spill] sm:$0xff] }
 0x1b9   : > { %1346 = vst [vmem:[%s3138_s30 + $0x118] sm:$0xff] %v1282_v59  ;;  %v1214_v43 = vmul.f32 %v3101_v35, %v1144_v22  ;;  %v1015_v13 = vmul.f32 %v1661_v38, %v1661_v38  ;;  %1670 = vrcp.f32 %v894_v4  ;;  %v832_v39 = vsub.f32 %v704_v44, %v2969_v5  ;;  %v4158_v22 = vld [vmem:[#allocation116_spill] sm:$0xff]  ;;  %v568_v45 = vpop.xlane.xlu1 %567 }
 0x1ba   : > { %1345 = vst [vmem:[%s3138_s30 + $0x110] sm:$0xff] %v1281_v34  ;;  %v1213_v10 = vmul.f32 %v3101_v35, %v1143_v56  ;;  %v4153_v24 = vsub.f32 %v4151_v49, %v4152_v32  ;;  %1672 = vrcp.f32 %v893_v7  ;;  %v831_v3 = vsub.f32 %v703_v60, %v2975_v0  ;;  %v1663_v31 = vpop.eup %1662  ;;  %v4164_v49 = vld [vmem:[#allocation120_spill] sm:$0xff] }
 0x1bb   : > { %v1284_v42 = vadd.f32 %v3119_v15, %v1214_v43  ;;  %v4156_v29 = vsub.f32 %v4154_v55, %v4155_v26  ;;  %v896_v46 = vadd.f32 1e-12, %v832_v39  ;;  %v706_v5 = vmul.f32 0.0078125, %v564_v57  ;;  %v1665_v16 = vpop.eup %1664  ;;  %v566_v30 = vpop.xlane.xlu0 %565  ;;  %v4167_v55 = vld [vmem:[#allocation52_spill] sm:$0xff]  ;;  %v4168_v26 = vld [vmem:[#allocation71_spill] sm:$0xff] }
 0x1bc   : > { %v1146_v51 = vmul.f32 %v4153_v24, %v1016_v21  ;;  %v1283_v58 = vadd.f32 %v3119_v15, %v1213_v10  ;;  %v1018_v25 = vmul.f32 %v1663_v31, %v1663_v31  ;;  %v895_v50 = vadd.f32 1e-12, %v831_v3 }
 0x1bd   : > { %v1145_v37 = vmul.f32 %v4156_v29, %v1015_v13  ;;  %1348 = vst [vmem:[%s3138_s30 + $0x128] sm:$0xff] %v1284_v42  ;;  %v705_v2 = vmul.f32 0.0078125, %v562_v18  ;;  %v1017_v59 = vmul.f32 %v1665_v16, %v1665_v16  ;;  %1674 = vrcp.f32 %v896_v46  ;;  %v4163_v42 = vld [vmem:[#allocation51_spill] sm:$0xff]  ;;  %v572_v57 = vpop.xlane.xlu1 %571 }
 0x1be   : > { %v1216_v36 = vmul.f32 %v3101_v35, %v1146_v51  ;;  %1347 = vst [vmem:[%s3138_s30 + $0x120] sm:$0xff] %v1283_v58  ;;  %v834_v6 = vsub.f32 %v706_v5, %v2984_v63  ;;  %v4159_v27 = vsub.f32 %v4157_v62, %v4158_v22  ;;  %1676 = vrcp.f32 %v895_v50  ;;  %v1667_v34 = vpop.eup %1666  ;;  %v4166_v51 = vld [vmem:[#allocation131_spill] sm:$0xff]  ;;  %v4171_v62 = vld [vmem:[#allocation72_spill] sm:$0xff] }
 0x1bf   : > { %v1215_v0 = vmul.f32 %v3101_v35, %v1145_v37  ;;  %v833_v19 = vsub.f32 %v705_v2, %v2992_v17  ;;  %v4162_v56 = vsub.f32 %v4160_v11, %v4161_v14  ;;  %v708_v63 = vmul.f32 0.0078125, %v568_v45  ;;  %v1669_v38 = vpop.eup %1668  ;;  %v570_v5 = vpop.xlane.xlu0 %569  ;;  %v4174_v11 = vld [vmem:[#allocation73_spill] sm:$0xff] }
 0x1c0   : > { %v1286_v8 = vadd.f32 %v3119_v15, %v1216_v36  ;;  %v1148_v53 = vmul.f32 %v4159_v27, %v1018_v25  ;;  %v898_v44 = vadd.f32 1e-12, %v834_v6  ;;  %v1020_v21 = vmul.f32 %v1667_v34, %v1667_v34 }
 0x1c1   : > { %v1285_v9 = vadd.f32 %v3119_v15, %v1215_v0  ;;  %v1147_v4 = vmul.f32 %v4162_v56, %v1017_v59  ;;  %v897_v7 = vadd.f32 1e-12, %v833_v19  ;;  %v707_v60 = vmul.f32 0.0078125, %v566_v30  ;;  %v576_v19 = vpop.xlane.xlu1 %575 }
 0x1c2   : > { %1350 = vst [vmem:[%s3138_s30 + $0x138] sm:$0xff] %v1286_v8  ;;  %v1218_v43 = vmul.f32 %v3101_v35, %v1148_v53  ;;  %v1019_v10 = vmul.f32 %v1669_v38, %v1669_v38  ;;  %1678 = vrcp.f32 %v898_v44  ;;  %v836_v13 = vsub.f32 %v708_v63, %v2998_v1  ;;  %v4170_v8 = vld [vmem:[#allocation53_spill] sm:$0xff] }
 0x1c3   : > { %1349 = vst [vmem:[%s3138_s30 + $0x130] sm:$0xff] %v1285_v9  ;;  %v1217_v17 = vmul.f32 %v3101_v35, %v1147_v4  ;;  %v4165_v32 = vsub.f32 %v4163_v42, %v4164_v49  ;;  %1680 = vrcp.f32 %v897_v7  ;;  %v835_v3 = vsub.f32 %v707_v60, %v4166_v51  ;;  %v1671_v31 = vpop.eup %1670  ;;  %v4173_v9 = vld [vmem:[#allocation54_spill] sm:$0xff]  ;;  %v574_v44 = vpop.xlane.xlu0 %573 }
 0x1c4   : > { %v1288_v39 = vadd.f32 %v3119_v15, %v1218_v43  ;;  %v4169_v29 = vsub.f32 %v4167_v55, %v4168_v26  ;;  %v900_v46 = vadd.f32 1e-12, %v836_v13  ;;  %v710_v1 = vmul.f32 0.0078125, %v572_v57  ;;  %v1673_v18 = vpop.eup %1672  ;;  %v4177_v13 = vld [vmem:[#allocation77_spill] sm:$0xff] }
 0x1c5   : > { %v1150_v24 = vmul.f32 %v4165_v32, %v1020_v21  ;;  %v1287_v58 = vadd.f32 %v3119_v15, %v1217_v17  ;;  %v1022_v36 = vmul.f32 %v1671_v31, %v1671_v31  ;;  %v899_v25 = vadd.f32 1e-12, %v835_v3  ;;  %v580_v32 = vpop.xlane.xlu1 %579  ;;  %v4180_v3 = vld [vmem:[#allocation78_spill] sm:$0xff] }
 0x1c6   : > { %v1149_v37 = vmul.f32 %v4169_v29, %v1019_v10  ;;  %1352 = vst [vmem:[%s3138_s30 + $0x148] sm:$0xff] %v1288_v39  ;;  %v709_v50 = vmul.f32 0.0078125, %v570_v5  ;;  %v1021_v0 = vmul.f32 %v1673_v18, %v1673_v18  ;;  %1682 = vrcp.f32 %v900_v46  ;;  %v4176_v10 = vld [vmem:[#allocation55_spill] sm:$0xff]  ;;  %v3452_v29 = vld [vmem:[%s3625_s1] ss:$0 sm:$0xff] }
 0x1c7   : > { %v1220_v16 = vmul.f32 %v3101_v35, %v1150_v24  ;;  %1351 = vst [vmem:[%s3138_s30 + $0x140] sm:$0xff] %v1287_v58  ;;  %v838_v59 = vsub.f32 %v710_v1, %v3021_v23  ;;  %v4172_v22 = vsub.f32 %v4170_v8, %v4171_v62  ;;  %1684 = vrcp.f32 %v899_v25  ;;  %v1675_v45 = vpop.eup %1674  ;;  %v578_v55 = vpop.xlane.xlu0 %577  ;;  %v4182_v25 = vld [vmem:[#allocation57_spill] sm:$0xff] }
 0x1c8   : > { %v1219_v2 = vmul.f32 %v3101_v35, %v1149_v37  ;;  %v837_v53 = vsub.f32 %v709_v50, %v3030_v47  ;;  %v4175_v14 = vsub.f32 %v4173_v9, %v4174_v11  ;;  %v712_v23 = vmul.f32 0.0078125, %v576_v19  ;;  %v1677_v63 = vpop.eup %1676  ;;  %v4183_v50 = vld [vmem:[#allocation126_spill] sm:$0xff] }
 0x1c9   : > { %v1290_v6 = vadd.f32 %v3119_v15, %v1220_v16  ;;  %v1152_v27 = vmul.f32 %v4172_v22, %v1022_v36  ;;  %v902_v4 = vadd.f32 1e-12, %v838_v59  ;;  %v1024_v38 = vmul.f32 %v1675_v45, %v1675_v45  ;;  %v3461_v16 = vld [vmem:[%s3626_s2] ss:$0 sm:$0xff]  ;;  %v4186_v22 = vld [vmem:[#allocation128_spill] sm:$0xff] }
 0x1ca   : > { %v1289_v34 = vadd.f32 %v3119_v15, %v1219_v2  ;;  %v1151_v56 = vmul.f32 %v4175_v14, %v1021_v0  ;;  %v901_v43 = vadd.f32 1e-12, %v837_v53  ;;  %v711_v21 = vmul.f32 0.0078125, %v574_v44 }
 0x1cb   : > { %1354 = vst [vmem:[%s3138_s30 + $0x158] sm:$0xff] %v1290_v6  ;;  %v1222_v30 = vmul.f32 %v3101_v35, %v1152_v27  ;;  %v1023_v7 = vmul.f32 %v1677_v63, %v1677_v63  ;;  %1686 = vrcp.f32 %v902_v4  ;;  %v840_v60 = vsub.f32 %v712_v23, %v3036_v54  ;;  %v584_v6 = vpop.xlane.xlu1 %583 }
 0x1cc   : > { %1353 = vst [vmem:[%s3138_s30 + $0x150] sm:$0xff] %v1289_v34  ;;  %v1221_v47 = vmul.f32 %v3101_v35, %v1151_v56  ;;  %v4178_v39 = vsub.f32 %v4176_v10, %v4177_v13  ;;  %1688 = vrcp.f32 %v901_v43  ;;  %v839_v49 = vsub.f32 %v711_v21, %v3047_v61  ;;  %v1679_v24 = vpop.eup %1678  ;;  %v4179_v35 = vld [vmem:[#allocation56_spill] sm:$0xff]  ;;  %v582_v34 = vpop.xlane.xlu0 %581  ;;  %v4191_v10 = vld [vmem:[#allocation130_spill] sm:$0xff] }
 0x1cd   : > { %v1292_v17 = vadd.f32 %v3119_v15, %v1222_v30  ;;  %v4181_v57 = vsub.f32 %v4179_v35, %v4180_v3  ;;  %v904_v58 = vadd.f32 1e-12, %v840_v60  ;;  %v714_v54 = vmul.f32 0.0078125, %v580_v32  ;;  %v1681_v26 = vpop.eup %1680  ;;  %v4188_v30 = vld [vmem:[#allocation59_spill] sm:$0xff] }
 0x1ce   : > { %v1154_v42 = vmul.f32 %v4178_v39, %v1024_v38  ;;  %v1291_v51 = vadd.f32 %v3119_v15, %v1221_v47  ;;  %v1026_v37 = vmul.f32 %v1679_v24, %v1679_v24  ;;  %v903_v46 = vadd.f32 1e-12, %v839_v49  ;;  %v4189_v38 = vld [vmem:[#allocation129_spill] sm:$0xff] }
 0x1cf   : > { %v1153_v31 = vmul.f32 %v4181_v57, %v1023_v7  ;;  %1356 = vst [vmem:[%s3138_s30 + $0x168] sm:$0xff] %v1292_v17  ;;  %v713_v1 = vmul.f32 0.0078125, %v578_v55  ;;  %v1025_v5 = vmul.f32 %v1681_v26, %v1681_v26  ;;  %1690 = vrcp.f32 %v904_v58  ;;  %v588_v7 = vpop.xlane.xlu1 %587  ;;  %v4194_v55 = vld [vmem:[#allocation140_spill] sm:$0xff] }
 0x1d0   : > { %v1224_v61 = vmul.f32 %v3452_v29, %v1154_v42  ;;  %1355 = vst [vmem:[%s3138_s30 + $0x160] sm:$0xff] %v1291_v51  ;;  %v842_v18 = vsub.f32 %v714_v54, %v3059_v28  ;;  %v4184_v2 = vsub.f32 %v4182_v25, %v4183_v50  ;;  %1692 = vrcp.f32 %v903_v46  ;;  %v1683_v8 = vpop.eup %1682  ;;  %v4185_v28 = vld [vmem:[#allocation58_spill] sm:$0xff]  ;;  %v586_v49 = vpop.xlane.xlu0 %585 }
 0x1d1   : > { %v1223_v15 = vmul.f32 %v3452_v29, %v1153_v31  ;;  %v841_v59 = vsub.f32 %v713_v1, %v3074_v41  ;;  %v4187_v27 = vsub.f32 %v4185_v28, %v4186_v22  ;;  %v716_v45 = vmul.f32 0.0078125, %v584_v6  ;;  %v1685_v9 = vpop.eup %1684  ;;  %v4195_v1 = vld [vmem:[#allocation62_spill] sm:$0xff]  ;;  %v4199_v22 = vld [vmem:[#allocation63_spill] sm:$0xff] }
 0x1d2   : > { %v1294_v36 = vadd.f32 %v3461_v16, %v1224_v61  ;;  %v1156_v0 = vmul.f32 %v4184_v2, %v1026_v37  ;;  %v906_v19 = vadd.f32 1e-12, %v842_v18  ;;  %v1028_v14 = vmul.f32 %v1683_v8, %v1683_v8  ;;  %v4198_v8 = vld [vmem:[#allocation141_spill] sm:$0xff] }
 0x1d3   : > { %v1293_v62 = vadd.f32 %v3461_v16, %v1223_v15  ;;  %v1155_v53 = vmul.f32 %v4187_v27, %v1025_v5  ;;  %v905_v56 = vadd.f32 1e-12, %v841_v59  ;;  %v715_v4 = vmul.f32 0.0078125, %v582_v34  ;;  %v592_v61 = vpop.xlane.xlu1 %591  ;;  %v4196_v15 = vld [vmem:[#allocation132_spill] sm:$0xff]  ;;  %v4200_v27 = vld [vmem:[#allocation133_spill] sm:$0xff] }
 0x1d4   : > { %1358 = vst [vmem:[%s3138_s30 + $0x178] sm:$0xff] %v1294_v36  ;;  %v1226_v11 = vmul.f32 %v3452_v29, %v1156_v0  ;;  %v1027_v23 = vmul.f32 %v1685_v9, %v1685_v9  ;;  %1694 = vrcp.f32 %v906_v19  ;;  %v844_v44 = vsub.f32 %v716_v45, %v3078_v33  ;;  %v590_v25 = vpop.xlane.xlu0 %589  ;;  %v4202_v45 = vld [vmem:[#allocation65_spill] sm:$0xff] }
 0x1d5   : > { %1357 = vst [vmem:[%s3138_s30 + $0x170] sm:$0xff] %v1293_v62  ;;  %v1225_v41 = vmul.f32 %v3452_v29, %v1155_v53  ;;  %v4190_v43 = vsub.f32 %v4188_v30, %v4189_v38  ;;  %1696 = vrcp.f32 %v905_v56  ;;  %v843_v47 = vsub.f32 %v715_v4, %v3088_v52  ;;  %v1687_v60 = vpop.eup %1686  ;;  %v4204_v56 = vld [vmem:[#allocation60_spill] sm:$0xff] }
 0x1d6   : > { %v1296_v63 = vadd.f32 %v3461_v16, %v1226_v11  ;;  %v4192_v13 = vsub.f32 %v4006_v20, %v4191_v10  ;;  %v908_v42 = vadd.f32 1e-12, %v844_v44  ;;  %v718_v33 = vmul.f32 0.0078125, %v588_v7  ;;  %v1689_v32 = vpop.eup %1688  ;;  %v4206_v30 = vld [vmem:[#allocation68_spill] sm:$0xff]  ;;  %v1713_v7 = vld [vmem:[%s2008_s10 + $0x1c0] sm:$0xff] }
 0x1d7   : > { %v1158_v21 = vmul.f32 %v4190_v43, %v1028_v14  ;;  %v1295_v17 = vadd.f32 %v3461_v16, %v1225_v41  ;;  %v1030_v51 = vmul.f32 %v1687_v60, %v1687_v60  ;;  %v907_v35 = vadd.f32 1e-12, %v843_v47  ;;  %v4203_v14 = vld [vmem:[#allocation64_spill] sm:$0xff]  ;;  %v4207_v60 = vld [vmem:[#allocation61_spill] sm:$0xff] }
 0x1d8   : > { %v1157_v39 = vmul.f32 %v4192_v13, %v1027_v23  ;;  %1360 = vst [vmem:[%s3138_s30 + $0x188] sm:$0xff] %v1296_v63  ;;  %v717_v3 = vmul.f32 0.0078125, %v586_v49  ;;  %v1029_v57 = vmul.f32 %v1689_v32, %v1689_v32  ;;  %1698 = vrcp.f32 %v908_v42  ;;  %v1712_v63 = vld [vmem:[%s2008_s10 + $0x1c8] sm:$0xff] }
 0x1d9   : > { %v1228_v24 = vmul.f32 %v3452_v29, %v1158_v21  ;;  %1359 = vst [vmem:[%s3138_s30 + $0x180] sm:$0xff] %v1295_v17  ;;  %v846_v31 = vsub.f32 %v718_v33, %v3092_v48  ;;  %v4193_v58 = vsub.f32 %v4008_v40, %v3001_v12  ;;  %1700 = vrcp.f32 %v907_v35  ;;  %v1691_v37 = vpop.eup %1690  ;;  %v4208_v35 = vld [vmem:[#allocation134_spill] sm:$0xff] }
 0x1da   : > { %v1227_v52 = vmul.f32 %v3452_v29, %v1157_v39  ;;  %v845_v26 = vsub.f32 %v717_v3, %v4194_v55  ;;  %v4197_v5 = vsub.f32 %v4195_v1, %v4196_v15  ;;  %v720_v48 = vmul.f32 0.0078125, %v592_v61  ;;  %v1693_v50 = vpop.eup %1692 }
 0x1db   : > { %v1298_v20 = vadd.f32 %v3461_v16, %v1228_v24  ;;  %v1160_v54 = vmul.f32 %v4193_v58, %v1030_v51  ;;  %v910_v36 = vadd.f32 1e-12, %v846_v31  ;;  %v1032_v40 = vmul.f32 %v1691_v37, %v1691_v37  ;;  %v1714_v51 = vld [vmem:[%s2008_s10 + $0x1d8] sm:$0xff]  ;;  %v1715_v31 = vld [vmem:[%s2008_s10 + $0x1d0] sm:$0xff] }
 0x1dc   : > { %v1297_v46 = vadd.f32 %v3461_v16, %v1227_v52  ;;  %v1159_v18 = vmul.f32 %v4197_v5, %v1029_v57  ;;  %v909_v2 = vadd.f32 1e-12, %v845_v26  ;;  %v719_v0 = vmul.f32 0.0078125, %v590_v25  ;;  %v1716_v5 = vld [vmem:[%s2008_s10 + $0x1e8] sm:$0xff] }
 0x1dd   : > { %1362 = vst [vmem:[%s3138_s30 + $0x198] sm:$0xff] %v1298_v20  ;;  %v1230_v12 = vmul.f32 %v3452_v29, %v1160_v54  ;;  %v1031_v6 = vmul.f32 %v1693_v50, %v1693_v50  ;;  %1702 = vrcp.f32 %v910_v36  ;;  %v848_v62 = vsub.f32 %v720_v48, %v4198_v8  ;;  %v4209_v20 = vld [vmem:[#allocation135_spill] sm:$0xff]  ;;  %v1717_v50 = vld [vmem:[%s2008_s10 + $0x1e0] sm:$0xff] }
 0x1de   : > { %1361 = vst [vmem:[%s3138_s30 + $0x190] sm:$0xff] %v1297_v46  ;;  %v1229_v59 = vmul.f32 %v3452_v29, %v1159_v18  ;;  %v4201_v53 = vsub.f32 %v4199_v22, %v4200_v27  ;;  %1704 = vrcp.f32 %v909_v2  ;;  %v847_v34 = vsub.f32 %v719_v0, %v4202_v45  ;;  %v1695_v9 = vpop.eup %1694  ;;  %v4210_v18 = vld [vmem:[#allocation136_spill] sm:$0xff] }
 0x1df   : > { %v1300_v28 = vadd.f32 %v3461_v16, %v1230_v12  ;;  %v4205_v4 = vsub.f32 %v4203_v14, %v4204_v56  ;;  %v912_v23 = vadd.f32 1e-12, %v848_v62  ;;  %v1697_v44 = vpop.eup %1696  ;;  %v1100_v38 = vsub.f32 %v1712_v63, %v4206_v30  ;;  %v4211_v12 = vld [vmem:[#allocation137_spill] sm:$0xff]  ;;  %v1718_v27 = vld [vmem:[%s2008_s10 + $0x1f8] sm:$0xff] }
 0x1e0   : > { %v1162_v19 = vmul.f32 %v4201_v53, %v1032_v40  ;;  %v1299_v11 = vadd.f32 %v3461_v16, %v1229_v59  ;;  %v1034_v21 = vmul.f32 %v1695_v9, %v1695_v9  ;;  %v911_v47 = vadd.f32 1e-12, %v847_v34  ;;  %v4212_v53 = vld [vmem:[#allocation138_spill] sm:$0xff]  ;;  %v1719_v9 = vld [vmem:[%s2008_s10 + $0x1f0] sm:$0xff] }
 0x1e1   : > { %v1161_v41 = vmul.f32 %v4205_v4, %v1031_v6  ;;  %1364 = vst [vmem:[%s3138_s30 + $0x1a8] sm:$0xff] %v1300_v28  ;;  %v1099_v17 = vsub.f32 %v1713_v7, %v4207_v60  ;;  %v1033_v13 = vmul.f32 %v1697_v44, %v1697_v44  ;;  %1706 = vrcp.f32 %v912_v23 }
 0x1e2   : > { %v1232_v43 = vmul.f32 %v3452_v29, %v1162_v19  ;;  %1363 = vst [vmem:[%s3138_s30 + $0x1a0] sm:$0xff] %v1299_v11  ;;  %v1164_v42 = vmul.f32 %v1100_v38, %v1034_v21  ;;  %1708 = vrcp.f32 %v911_v47  ;;  %v1699_v33 = vpop.eup %1698  ;;  %v1102_v3 = vsub.f32 %v1714_v51, %v4208_v35  ;;  %v4213_v11 = vld [vmem:[#allocation139_spill] sm:$0xff] }
 0x1e3   : > { %v1231_v10 = vmul.f32 %v3452_v29, %v1161_v41  ;;  %v1163_v32 = vmul.f32 %v1099_v17, %v1033_v13  ;;  %v1701_v24 = vpop.eup %1700  ;;  %v1036_v57 = vmul.f32 %v1699_v33, %v1699_v33  ;;  %v1101_v58 = vsub.f32 %v1715_v31, %v4209_v20 }
 0x1e4   : > { %v1302_v39 = vadd.f32 %v3461_v16, %v1232_v43  ;;  %v1234_v52 = vmul.f32 %v3452_v29, %v1164_v42  ;;  %v1035_v55 = vmul.f32 %v1701_v24, %v1701_v24  ;;  %v1104_v36 = vsub.f32 %v1716_v5, %v4210_v18 }
 0x1e5   : > { %v1301_v49 = vadd.f32 %v3461_v16, %v1231_v10  ;;  %v1233_v54 = vmul.f32 %v3452_v29, %v1163_v32  ;;  %v1166_v61 = vmul.f32 %v1102_v3, %v1036_v57  ;;  %v1103_v40 = vsub.f32 %v1717_v50, %v4211_v12 }
 0x1e6   : > { %1366 = vst [vmem:[%s3138_s30 + $0x1b8] sm:$0xff] %v1302_v39  ;;  %v1304_v26 = vadd.f32 %v3461_v16, %v1234_v52  ;;  %v1165_v1 = vmul.f32 %v1101_v58, %v1035_v55  ;;  %v1106_v19 = vsub.f32 %v1718_v27, %v4212_v53  ;;  %v1105_v14 = vsub.f32 %v1719_v9, %v4213_v11 }
 0x1e7   : > { %1365 = vst [vmem:[%s3138_s30 + $0x1b0] sm:$0xff] %v1301_v49  ;;  %v1703_v37 = vpop.eup %1702  ;;  %v1303_v46 = vadd.f32 %v3461_v16, %v1233_v54  ;;  %v1236_v48 = vmul.f32 %v3452_v29, %v1166_v61 }
 0x1e8   : > { %v1705_v15 = vpop.eup %1704  ;;  %1368 = vst [vmem:[%s3138_s30 + $0x1c8] sm:$0xff] %v1304_v26  ;;  %v1038_v25 = vmul.f32 %v1703_v37, %v1703_v37  ;;  %v1235_v2 = vmul.f32 %v3452_v29, %v1165_v1 }
 0x1e9   : > { %1367 = vst [vmem:[%s3138_s30 + $0x1c0] sm:$0xff] %v1303_v46  ;;  %v1037_v0 = vmul.f32 %v1705_v15, %v1705_v15  ;;  %v1306_v59 = vadd.f32 %v3461_v16, %v1236_v48 }
 0x1ea   : > { %v1168_v6 = vmul.f32 %v1104_v36, %v1038_v25  ;;  %v1305_v62 = vadd.f32 %v3461_v16, %v1235_v2 }
 0x1eb   : > { %v1707_v8 = vpop.eup %1706  ;;  %v1167_v28 = vmul.f32 %v1103_v40, %v1037_v0  ;;  %1370 = vst [vmem:[%s3138_s30 + $0x1d8] sm:$0xff] %v1306_v59 }
 0x1ec   : > { %v1709_v22 = vpop.eup %1708  ;;  %v1238_v45 = vmul.f32 %v3452_v29, %v1168_v6  ;;  %v1040_v34 = vmul.f32 %v1707_v8, %v1707_v8  ;;  %1369 = vst [vmem:[%s3138_s30 + $0x1d0] sm:$0xff] %v1305_v62 }
 0x1ed   : > { %v1237_v56 = vmul.f32 %v3452_v29, %v1167_v28  ;;  %v1039_v4 = vmul.f32 %v1709_v22, %v1709_v22 }
 0x1ee   : > { %v1308_v41 = vadd.f32 %v3461_v16, %v1238_v45  ;;  %v1170_v23 = vmul.f32 %v1106_v19, %v1040_v34 }
 0x1ef   : > { %v1307_v44 = vadd.f32 %v3461_v16, %v1237_v56  ;;  %v1169_v63 = vmul.f32 %v1105_v14, %v1039_v4 }
 0x1f0   : > { %1372 = vst [vmem:[%s3138_s30 + $0x1e8] sm:$0xff] %v1308_v41  ;;  %v1240_v30 = vmul.f32 %v3452_v29, %v1170_v23 }
 0x1f1   : > { %1371 = vst [vmem:[%s3138_s30 + $0x1e0] sm:$0xff] %v1307_v44  ;;  %v1239_v38 = vmul.f32 %v3452_v29, %v1169_v63 }
 0x1f2   : > { %v1310_v43 = vadd.f32 %v3461_v16, %v1240_v30 }
 0x1f3   : > { %v1309_v21 = vadd.f32 %v3461_v16, %v1239_v38 }
 0x1f4   : > { %1374 = vst [vmem:[%s3138_s30 + $0x1f8] sm:$0xff] %v1310_v43 }
 0x1f5   : > { %1373 = vst [vmem:[%s3138_s30 + $0x1f0] sm:$0xff] %v1309_v21 }
 0x1f6   : > { %1763 = shalt.err (!%p1760_p3)
}
 0x1f7   : > { %s1764_s30 = scalar_lea.hbm %s3565_s27, 8192  ;;  %s1768_s7 = scalar_lea.hbm %s3627_s3, 32768 }
 0x1f8   : > { %p1765_p5 = scmp.ne.s32.totalorder %s3565_s27, %s1764_s30  ;;  %p1769_p2 = scmp.lt.u32.totalorder %s3565_s27, %s3627_s3 }
 0x1f9   : > { %p1770_p4 = scmp.lt.u32.totalorder %s1768_s7, %s1764_s30  ;;  %p1772_p8 = scmp.lt.u32.totalorder %s1764_s30, %s3565_s27 }
 0x1fa   : > { %p1766_p6 = pnand %p1765_p5, %p4214_p9 }
 0x1fb   : > { %p1771_p10 = por %p1770_p4, %p1769_p2 }
 0x1fc   : > { %p1767_p7 = pneg %p1766_p6 }
 0x1fd   : > { %p1773_p12 = por %p1772_p8, %p1771_p10 }
 0x1ff   : > { %p1774_p0 = pnand %p1773_p12, %p1767_p7 }
 0x201   : > { %1777 = shalt.err (!%p1774_p0)
}
 0x202   : > { %s1854_s16 = smov 128   ;;  %s1855_s23 = smov 8  }
 0x203   : > { %1502 = dma.vmem_to_hbm [thread:$0]  (%p4214_p9), %s3567_s9, 8192, %s3565_s27, %s1376_s11, %s1854_s16, %s1854_s16, %s1855_s23  }
 0x204 PF: > { %p1513_p11 = scmp.ge.s32.totalorder %s1848_s19, 2  ;;  %s1406_s10 = sand.u32 1, %s1820_s12  }
 0x205   : > { %p4215_p13 = scmp.ne.s32.totalorder %s3810_s4, 0  ;;  %s1407_s21 = scalar_lea.sflag [#allocation4], %s1406_s10 }
 0x207   : > { %p1509_p1 = pnand %p1513_p11, %p4215_p13 }
 0x209   : > { %1815 = dma.done.wait (!%p1509_p1), %s1407_s21, 8192  }
 0x20a   : > { %1817 = vsyncadd (!%p1509_p1), %s1407_s21, 4294959104  ;;  %s19_s19 = sadd.s32 1, %s1848_s19   ;;  %s4216_s28 = sld [smem:[#allocation8_spill]] }
 0x20b   : > { %p16_p3 = scmp.ge.s32.totalorder %s19_s19, 6   ;;  %s4217_s12 = smov %s1824_s13 }
 0x20c   : > { %s4218_s13 = smov %s1828_s14  ;;  %s4219_s14 = smov %s1954_s6 }
 0x20d   : > { %s4220_s15 = smov %s1840_s17  ;;  %s4221_s16 = smov %s1844_s18 }
 0x20e   : > { %s4222_s17 = smov %s4225_s22  ;;  %18 = sbr.rel (!%p16_p3) target bundleno = 7 (0x7), region = 77 }
 0x210   : > { %s4223_s18 = smov %s4216_s28 }
 0x215   :  { %1412 = vsyncpa [#allocation3], 1 }
 0x216   :  { %1414 = vsyncpa [#allocation3 + $0x1], 1 }
 0x217   :  { %1415 = vsyncpa [#allocation4], 1 }
 0x218   :  { %1417 = vsyncpa [#allocation4 + $0x1], 1 }

</bundles_post_ra>
